<compile_context>
chip_gen: v7x
topology: tpu7x:2x2x1
jax: 0.10.0
libtpu: 0.0.40
codegen_flags: <defaults>
</compile_context>

<pallas_src>
import functools
import math

import jax
import jax.numpy as jnp
from jax.experimental import pallas as pl
from jax.experimental.pallas import tpu as pltpu


# ----------------------------------------------------------------------------
# Hardware-aware knobs
# ----------------------------------------------------------------------------

@functools.lru_cache(maxsize=None)
def _vmem_budgets():
    """(vmem_limit_bytes, per-tile working-set budget), generation-aware."""
    cap = 64 * 1024 * 1024                       # conservative fallback (v7x)
    try:
        cap = int(pltpu.get_tpu_info().vmem_capacity_bytes)
    except Exception:
        pass
    limit = min(max(int(cap * 3 // 4), 32 * 1024 * 1024), 112 * 1024 * 1024)
    return limit, limit // 2


@functools.lru_cache(maxsize=None)
def _elementwise_dtype():
    """bf16 elementwise on v6e/v7x; f32 on v5e (no bf16 VPU)."""
    try:
        kind = jax.devices()[0].device_kind.lower()
        if "v5 lite" in kind or "v5e" in kind or "v5lite" in kind:
            return jnp.float32
    except Exception:
        pass
    return jnp.bfloat16


def _pick_tile(dim, per_row_bytes, *, min_grid_steps=1):
    """Largest multiple-of-16 divisor of `dim` that fits the VMEM tile budget
    and leaves at least `min_grid_steps` grid steps along this axis."""
    _, budget = _vmem_budgets()
    cap = max(16, budget // max(per_row_bytes, 1))
    if min_grid_steps > 1:
        cap = min(cap, max(16, dim // min_grid_steps))
    cap = min(cap, dim)
    best = None
    for t in range(16, cap + 1, 16):             # 16 = bf16 sublane tile
        if dim % t == 0:
            best = t
    if best is None:
        # TODO(synk): mask partial tail tiles instead of falling back to full dim.
        best = dim
    return best


def _proj_row_bytes(cin, ncols):
    return 2 * (cin * 2 + ncols * 4) + ncols * 4


def _combine_vertex_bytes(n, cout, s, ew_bytes):
    sc = s * cout
    io = 2 * (n * 128 * 2        # ndn block (3 -> 128 lane pad), bf16, 2 bufs
              + n * sc * 2       # gathered support, bf16
              + cout * 4         # center (f32)
              + cout * 4)        # output (f32)
    inter = 2 * n * sc * ew_bytes + 2 * sc * 4
    return io + inter


def _surface_vertex_bytes(n, k, s, ew_bytes):
    io = 2 * (n * 128 * 2 + k * 4)
    inter = n * s * k * ew_bytes + 2 * s * k * 4
    return io + inter


# ----------------------------------------------------------------------------
# Pallas kernels
# ----------------------------------------------------------------------------

def _conv_surface_kernel(ndn_ref, dirs_ref, out_ref, *, n, s, k, ew_dtype):
    """theta = relu(ndn @ dirs); max over neighbors; sum over supports."""
    tv = out_ref.shape[1]
    ndn = ndn_ref[0].reshape(n * tv, 3)
    # TODO(synk): on v5e, if the vmatmul slot saturates, move this K=3 matmul
    # to a VPU formulation (3 broadcast multiply-adds of dirs rows).
    theta = jnp.dot(ndn, dirs_ref[...], preferred_element_type=jnp.float32)
    theta = jnp.maximum(theta, 0.0).astype(ew_dtype)
    mx = theta[0:tv]
    for i in range(1, n):                                   # max over neighbors
        mx = jnp.maximum(mx, theta[i * tv:(i + 1) * tv])
    mx = mx.astype(jnp.float32)
    acc = mx[:, 0:k]
    for j in range(1, s):                                   # sum over supports
        acc = acc + mx[:, j * k:(j + 1) * k]
    out_ref[0] = acc


def _proj_kernel(fm_ref, w_ref, b_ref, out_ref):
    """out = fm @ [Wc | Ws] + b  (center + all supports in one MXU pass)."""
    out_ref[...] = jnp.dot(fm_ref[...], w_ref[...],
                           preferred_element_type=jnp.float32) + b_ref[...]


def _conv_combine_kernel(ndn_ref, supn_ref, center_ref, dirs_ref, out_ref,
                         *, n, s, cout, ew_dtype):
    """out = center + sum_s max_n( relu(ndn @ dirs) * support_nbr )."""
    tv = out_ref.shape[1]
    sc = s * cout
    ndn = ndn_ref[0].reshape(n * tv, 3)
    theta = jnp.dot(ndn, dirs_ref[...], preferred_element_type=jnp.float32)
    theta = jnp.maximum(theta, 0.0).astype(ew_dtype)
    sup = supn_ref[0].reshape(n * tv, sc).astype(ew_dtype)
    # Multiply folded into the neighbor-max loop: no (n*tv, s*cout) temp.
    mx = theta[0:tv] * sup[0:tv]
    for i in range(1, n):
        lo = i * tv
        mx = jnp.maximum(mx, theta[lo:lo + tv] * sup[lo:lo + tv])
    mx = mx.astype(jnp.float32)
    acc = mx[:, 0:cout]
    for j in range(1, s):
        acc = acc + mx[:, j * cout:(j + 1) * cout]
    out_ref[0] = center_ref[0] + acc


# ----------------------------------------------------------------------------
# pallas_call wrappers
# ----------------------------------------------------------------------------

def conv_surface_pallas(ndn_bf16, dirs, s, k):
    """ndn_bf16: (bs, n, V, 3) normalized neighbor directions -> (bs, V, k)."""
    bs, n, V, _ = ndn_bf16.shape
    ew = _elementwise_dtype()
    vmem_limit, _ = _vmem_budgets()
    tv = _pick_tile(V, _surface_vertex_bytes(n, k, s, jnp.dtype(ew).itemsize),
                    min_grid_steps=max(1, -(-8 // bs)))
    assert V % tv == 0, (V, tv)
    kern = functools.partial(_conv_surface_kernel, n=n, s=s, k=k, ew_dtype=ew)
    return pl.pallas_call(
        kern,
        out_shape=jax.ShapeDtypeStruct((bs, V, k), jnp.float32),
        grid=(bs, V // tv),
        in_specs=[
            pl.BlockSpec((1, n, tv, 3), lambda b, i: (b, 0, i, 0)),
            pl.BlockSpec((3, s * k), lambda b, i: (0, 0)),
        ],
        out_specs=pl.BlockSpec((1, tv, k), lambda b, i: (b, i, 0)),
        compiler_params=pltpu.CompilerParams(
            dimension_semantics=("parallel", "parallel"),
            vmem_limit_bytes=vmem_limit),
    )(ndn_bf16, dirs.astype(jnp.bfloat16))


def conv_layer_pallas(ndn_bf16, fm, nidx, p, s, cin, cout):
    """GCN3D Conv_layer, reference ordering:
         feat    = fm @ [Wc | Ws] + b             (per-vertex, ONE fused matmul)
         center, support = split(feat)
         support_nbr = gather(support, nidx)      (bf16, plain-JAX gather)
         out = center + sum_s max_n( relu(ndn @ dirs) * support_nbr )
    """
    bs, n, V, _ = ndn_bf16.shape
    ew = _elementwise_dtype()
    vmem_limit, _ = _vmem_budgets()
    ncols = (s + 1) * cout

    # ---- stage 1: fused center + support projection over M = bs*V rows ----
    M = bs * V
    fm2 = fm.reshape(M, cin).astype(jnp.bfloat16)
    tm = _pick_tile(M, _proj_row_bytes(cin, ncols), min_grid_steps=8)
    assert M % tm == 0, (M, tm)
    proj = pl.pallas_call(
        _proj_kernel,
        out_shape=jax.ShapeDtypeStruct((M, ncols), jnp.float32),
        grid=(M // tm,),
        in_specs=[
            pl.BlockSpec((tm, cin), lambda i: (i, 0)),
            pl.BlockSpec((cin, ncols), lambda i: (0, 0)),
            pl.BlockSpec((1, ncols), lambda i: (0, 0)),
        ],
        out_specs=pl.BlockSpec((tm, ncols), lambda i: (i, 0)),
        compiler_params=pltpu.CompilerParams(
            dimension_semantics=("parallel",),
            vmem_limit_bytes=vmem_limit),
    )(fm2, p["w"].astype(jnp.bfloat16), p["b"]).reshape(bs, V, ncols)

    center = proj[..., :cout]                           # (bs, V, cout)  f32
    support = proj[..., cout:].astype(jnp.bfloat16)     # (bs, V, s*cout) bf16
    sup_nbr = indexing_neighbor_nvc(support, nidx)      # (bs, n, V, s*cout)

    # ---- stage 2: theta * gathered support, max over nbrs, sum supports ----
    tv = _pick_tile(V, _combine_vertex_bytes(n, cout, s, jnp.dtype(ew).itemsize),
                    min_grid_steps=max(1, -(-8 // bs)))
    assert V % tv == 0, (V, tv)
    kern = functools.partial(_conv_combine_kernel, n=n, s=s, cout=cout,
                             ew_dtype=ew)
    return pl.pallas_call(
        kern,
        out_shape=jax.ShapeDtypeStruct((bs, V, cout), jnp.float32),
        grid=(bs, V // tv),
        in_specs=[
            pl.BlockSpec((1, n, tv, 3), lambda b, i: (b, 0, i, 0)),
            pl.BlockSpec((1, n, tv, s * cout), lambda b, i: (b, 0, i, 0)),
            pl.BlockSpec((1, tv, cout), lambda b, i: (b, i, 0)),
            pl.BlockSpec((3, s * cout), lambda b, i: (0, 0)),
        ],
        out_specs=pl.BlockSpec((1, tv, cout), lambda b, i: (b, i, 0)),
        compiler_params=pltpu.CompilerParams(
            dimension_semantics=("parallel", "parallel"),
            vmem_limit_bytes=vmem_limit),
    )(ndn_bf16, sup_nbr, center, p["dirs"].astype(jnp.bfloat16))


# ----------------------------------------------------------------------------
# Plain-JAX glue (kNN search, gathers, batchnorm, pooling)
# ----------------------------------------------------------------------------

def get_neighbor_index(vertices, neighbor_num):
    inner = jnp.einsum("bvd,bwd->bvw", vertices, vertices)
    quad = jnp.sum(vertices ** 2, axis=-1)
    dist = -2.0 * inner + quad[:, None, :] + quad[:, :, None]
    _, idx = jax.lax.top_k(-dist, neighbor_num + 1)             # smallest dists
    return idx[:, :, 1:]                                        # drop self


def indexing_neighbor(tensor, index):
    # tensor: (bs, V, C); index: (bs, V1, n) -> (bs, V1, n, C)
    return jax.vmap(lambda t, i: t[i])(tensor, index)


def indexing_neighbor_nvc(tensor, index):
    # tensor: (bs, V, C); index: (bs, V1, n) -> (bs, n, V1, C)
    # Neighbor-major gather: no HBM transpose of the (big) result.
    idx_t = jnp.transpose(index, (0, 2, 1))                     # (bs, n, V1)
    return jax.vmap(lambda t, i: t[i])(tensor, idx_t)


def get_neighbor_direction_norm(vertices, neighbor_index):
    # -> (bs, n, V, 3) bf16, already in the kernels' neighbor-major layout.
    nbrs = indexing_neighbor_nvc(vertices, neighbor_index)      # (bs, n, V, 3)
    direction = nbrs - vertices[:, None, :, :]
    norm = jnp.linalg.norm(direction, axis=-1, keepdims=True)
    return (direction / jnp.maximum(norm, 1e-12)).astype(jnp.bfloat16)


def get_nearest_index(target, source):
    inner = jnp.einsum("bvd,bwd->bvw", target, source)
    s2 = jnp.sum(source ** 2, axis=-1)
    t2 = jnp.sum(target ** 2, axis=-1)
    d = s2[:, None, :] + t2[:, :, None] - 2.0 * inner
    return jnp.argmin(d, axis=-1)[..., None]                    # (bs, V, 1)


def batchnorm1d_train(x, eps=1e-5):
    # PyTorch BatchNorm1d in training mode, affine params at default (1, 0).
    mean = jnp.mean(x, axis=(0, 1), keepdims=True)
    var = jnp.mean((x - mean) ** 2, axis=(0, 1), keepdims=True)
    return (x - mean) / jnp.sqrt(var + eps)


def pool_layer(vertices, feature_map, pooling_rate, neighbor_num, key):
    bs, V, _ = vertices.shape
    nidx = get_neighbor_index(vertices, neighbor_num)
    nbr_feat = indexing_neighbor(feature_map, nidx)
    pooled = jnp.max(nbr_feat, axis=2)
    pool_num = V // pooling_rate
    # TODO(synk): PyTorch uses torch.randperm (nondeterministic); replaced with
    # a fixed-key permutation so the script is deterministic.
    sample_idx = jax.random.permutation(key, V)[:pool_num]
    return vertices[:, sample_idx, :], pooled[:, sample_idx, :]


# ----------------------------------------------------------------------------
# Parameter init (deterministic, mirrors the PyTorch initialize())
# ----------------------------------------------------------------------------

def _normalize_cols(d):
    n = jnp.linalg.norm(d, axis=0, keepdims=True)
    return d / jnp.maximum(n, 1e-12)


def init_conv_surface(key, kernel_num, support_num):
    stdv = 1.0 / math.sqrt(support_num * kernel_num)
    dirs = jax.random.uniform(key, (3, support_num * kernel_num),
                              jnp.float32, -stdv, stdv)
    return _normalize_cols(dirs)


def init_conv_layer(key, cin, cout, support_num):
    stdv = 1.0 / math.sqrt(cout * (support_num + 1))
    k1, k2, k3 = jax.random.split(key, 3)
    W = jax.random.uniform(k1, (cin, (support_num + 1) * cout),
                           jnp.float32, -stdv, stdv)
    b = jax.random.uniform(k2, ((support_num + 1) * cout,),
                           jnp.float32, -stdv, stdv)
    d = jax.random.uniform(k3, (3, support_num * cout),
                           jnp.float32, -stdv, stdv)
    return {"w": W, "b": b[None, :], "dirs": _normalize_cols(d)}


def init_params(key, support_num):
    ks = jax.random.split(key, 5)
    return {
        "c0_dirs": init_conv_surface(ks[0], 128, support_num),
        "c1": init_conv_layer(ks[1], 128, 128, support_num),
        "c2": init_conv_layer(ks[2], 128, 256, support_num),
        "c3": init_conv_layer(ks[3], 256, 256, support_num),
        "c4": init_conv_layer(ks[4], 256, 512, support_num),
    }


# ----------------------------------------------------------------------------
# FaceRecon_feat forward
# ----------------------------------------------------------------------------

def face_recon_feat(vertices, params, neighbor_num, support_num, pool_key):
    s = support_num
    pk1, pk2 = jax.random.split(pool_key)

    nidx = get_neighbor_index(vertices, neighbor_num)
    ndn = get_neighbor_direction_norm(vertices, nidx)           # (bs, n, V, 3)

    # conv_0: in-kernel relu(theta) makes the output >= 0, so the PyTorch outer
    # F.relu is a mathematical no-op and is omitted.
    fm_0 = conv_surface_pallas(ndn, params["c0_dirs"], s, 128)

    # conv_1 -> bn1 -> relu
    fm_1 = conv_layer_pallas(ndn, fm_0, nidx, params["c1"], s, 128, 128)
    fm_1 = jnp.maximum(batchnorm1d_train(fm_1), 0.0)

    v1, f1 = pool_layer(vertices, fm_1, pooling_rate=4, neighbor_num=4, key=pk1)
    n1 = min(neighbor_num, v1.shape[1] // 8)
    nidx1 = get_neighbor_index(v1, n1)
    ndn1 = get_neighbor_direction_norm(v1, nidx1)

    fm_2 = conv_layer_pallas(ndn1, f1, nidx1, params["c2"], s, 128, 256)
    fm_2 = jnp.maximum(batchnorm1d_train(fm_2), 0.0)

    fm_3 = conv_layer_pallas(ndn1, fm_2, nidx1, params["c3"], s, 256, 256)
    fm_3 = jnp.maximum(batchnorm1d_train(fm_3), 0.0)

    v2, f3p = pool_layer(v1, fm_3, pooling_rate=4, neighbor_num=4, key=pk2)
    n2 = min(neighbor_num, v2.shape[1] // 8)
    nidx2 = get_neighbor_index(v2, n2)
    ndn2 = get_neighbor_direction_norm(v2, nidx2)

    fm_4 = conv_layer_pallas(ndn2, f3p, nidx2, params["c4"], s, 256, 512)

    near1 = get_nearest_index(vertices, v1)
    near2 = get_nearest_index(vertices, v2)
    fm_2u = indexing_neighbor(fm_2, near1)[:, :, 0, :]
    fm_3u = indexing_neighbor(fm_3, near1)[:, :, 0, :]
    fm_4u = indexing_neighbor(fm_4, near2)[:, :, 0, :]

    return jnp.concatenate([fm_0, fm_1, fm_2u, fm_3u, fm_4u], axis=2)


# ----------------------------------------------------------------------------
# Main
# ----------------------------------------------------------------------------

if __name__ == "__main__":
    NEIGHBOR_NUM = 8   # gcn_n_num
    SUPPORT_NUM = 4    # gcn_sup_num
    bs, V = 2, 256     # V divisible by 16 (two 4x pools)

    root = jax.random.PRNGKey(0)
    k_vert, k_param, k_pool = jax.random.split(root, 3)
    vertices = jax.random.normal(k_vert, (bs, V, 3), jnp.float32)
    params = init_params(k_param, SUPPORT_NUM)

    feat = face_recon_feat(vertices, params, NEIGHBOR_NUM, SUPPORT_NUM, k_pool)
    feat = jax.block_until_ready(feat)

    assert feat.shape == (bs, V, 128 + 128 + 256 + 256 + 512), feat.shape
    assert feat.dtype == jnp.float32
    assert bool(jnp.all(jnp.isfinite(feat)))
    print("KERNEL_OK")
</pallas_src>

<mosaic_0001>
module attributes {stable_mosaic.version = 11 : i64} {
  func.func @_conv_surface_kernel(%arg0: i32, %arg1: i32, %arg2: memref<1x8x64x3xbf16, #tpu.memory_space<vmem>>, %arg3: memref<3x512xbf16, #tpu.memory_space<vmem>>, %arg4: memref<1x64x128xf32, #tpu.memory_space<vmem>>) attributes {dimension_semantics = [#tpu.dimension_semantics<parallel>, #tpu.dimension_semantics<parallel>], iteration_bounds = array<i64: 2, 4>, scalar_prefetch = 0 : i64, scratch_operands = 0 : i64, tpu.core_type = #tpu.core_type<tc>, window_params = [{transform_indices = @transform_0, window_bounds = array<i64: 1, 8, 64, 3>}, {pipeline_mode = #tpu.pipeline_mode<synchronous>, transform_indices = @transform_1, window_bounds = array<i64: 3, 512>}, {transform_indices = @transform_2, window_bounds = array<i64: 1, 64, 128>}]} {
    %c0 = arith.constant 0 : index
    %c0_0 = arith.constant 0 : index
    %c0_1 = arith.constant 0 : index
    %c0_2 = arith.constant 0 : index
    %0 = vector.load %arg2[%c0, %c0_0, %c0_1, %c0_2] : memref<1x8x64x3xbf16, #tpu.memory_space<vmem>>, vector<1x8x64x3xbf16>
    %1 = vector.shape_cast %0 : vector<1x8x64x3xbf16> to vector<8x64x3xbf16>
    %2 = vector.shape_cast %1 : vector<8x64x3xbf16> to vector<512x3xbf16>
    %c0_3 = arith.constant 0 : index
    %c0_4 = arith.constant 0 : index
    %3 = vector.load %arg3[%c0_3, %c0_4] : memref<3x512xbf16, #tpu.memory_space<vmem>>, vector<3x512xbf16>
    %cst = arith.constant dense<0.000000e+00> : vector<512x512xf32>
    %4 = tpu.matmul %2, %3, %cst {dimension_numbers = #tpu.dot_dimension_numbers<[1], [0], [0], [1], [0, 0, 1, 1], [], []>} : vector<512x3xbf16>, vector<3x512xbf16>, vector<512x512xf32> -> vector<512x512xf32>
    %cst_5 = arith.constant 0.000000e+00 : f32
    %5 = vector.broadcast %cst_5 : f32 to vector<512x512xf32>
    %6 = arith.maximumf %4, %5 : vector<512x512xf32>
    %7 = arith.truncf %6 : vector<512x512xf32> to vector<512x512xbf16>
    %8 = vector.extract_strided_slice %7 {offsets = [0, 0], sizes = [64, 512], strides = [1, 1]} : vector<512x512xbf16> to vector<64x512xbf16>
    %9 = vector.extract_strided_slice %7 {offsets = [64, 0], sizes = [64, 512], strides = [1, 1]} : vector<512x512xbf16> to vector<64x512xbf16>
    %10 = arith.maximumf %8, %9 : vector<64x512xbf16>
    %11 = vector.extract_strided_slice %7 {offsets = [128, 0], sizes = [64, 512], strides = [1, 1]} : vector<512x512xbf16> to vector<64x512xbf16>
    %12 = arith.maximumf %10, %11 : vector<64x512xbf16>
    %13 = vector.extract_strided_slice %7 {offsets = [192, 0], sizes = [64, 512], strides = [1, 1]} : vector<512x512xbf16> to vector<64x512xbf16>
    %14 = arith.maximumf %12, %13 : vector<64x512xbf16>
    %15 = vector.extract_strided_slice %7 {offsets = [256, 0], sizes = [64, 512], strides = [1, 1]} : vector<512x512xbf16> to vector<64x512xbf16>
    %16 = arith.maximumf %14, %15 : vector<64x512xbf16>
    %17 = vector.extract_strided_slice %7 {offsets = [320, 0], sizes = [64, 512], strides = [1, 1]} : vector<512x512xbf16> to vector<64x512xbf16>
    %18 = arith.maximumf %16, %17 : vector<64x512xbf16>
    %19 = vector.extract_strided_slice %7 {offsets = [384, 0], sizes = [64, 512], strides = [1, 1]} : vector<512x512xbf16> to vector<64x512xbf16>
    %20 = arith.maximumf %18, %19 : vector<64x512xbf16>
    %21 = vector.extract_strided_slice %7 {offsets = [448, 0], sizes = [64, 512], strides = [1, 1]} : vector<512x512xbf16> to vector<64x512xbf16>
    %22 = arith.maximumf %20, %21 : vector<64x512xbf16>
    %23 = arith.extf %22 : vector<64x512xbf16> to vector<64x512xf32>
    %24 = vector.extract_strided_slice %23 {offsets = [0, 0], sizes = [64, 128], strides = [1, 1]} : vector<64x512xf32> to vector<64x128xf32>
    %25 = vector.extract_strided_slice %23 {offsets = [0, 128], sizes = [64, 128], strides = [1, 1]} : vector<64x512xf32> to vector<64x128xf32>
    %26 = arith.addf %24, %25 : vector<64x128xf32>
    %27 = vector.extract_strided_slice %23 {offsets = [0, 256], sizes = [64, 128], strides = [1, 1]} : vector<64x512xf32> to vector<64x128xf32>
    %28 = arith.addf %26, %27 : vector<64x128xf32>
    %29 = vector.extract_strided_slice %23 {offsets = [0, 384], sizes = [64, 128], strides = [1, 1]} : vector<64x512xf32> to vector<64x128xf32>
    %30 = arith.addf %28, %29 : vector<64x128xf32>
    %c0_6 = arith.constant 0 : index
    %c0_7 = arith.constant 0 : index
    %c0_8 = arith.constant 0 : index
    %31 = vector.load %arg4[%c0_6, %c0_7, %c0_8] : memref<1x64x128xf32, #tpu.memory_space<vmem>>, vector<1x64x128xf32>
    %32 = vector.shape_cast %31 : vector<1x64x128xf32> to vector<64x128xf32>
    %33 = vector.shape_cast %30 : vector<64x128xf32> to vector<1x64x128xf32>
    tpu.vector_store %arg4[%c0_6, %c0_7, %c0_8], %33 {strides = array<i32>} : memref<1x64x128xf32, #tpu.memory_space<vmem>>, vector<1x64x128xf32>,
    return
  }
  func.func @transform_0(%arg0: i32, %arg1: i32) -> (i32, i32, i32, i32) {
    %c0_i32 = arith.constant 0 : i32
    %c0_i32_0 = arith.constant 0 : i32
    %c0_i32_1 = arith.constant 0 : i32
    return %arg0, %c0_i32, %arg1, %c0_i32_0 : i32, i32, i32, i32
  }
  func.func @transform_1(%arg0: i32, %arg1: i32) -> (i32, i32) {
    %c0_i32 = arith.constant 0 : i32
    %c0_i32_0 = arith.constant 0 : i32
    %c0_i32_1 = arith.constant 0 : i32
    return %c0_i32, %c0_i32_0 : i32, i32
  }
  func.func @transform_2(%arg0: i32, %arg1: i32) -> (i32, i32, i32) {
    %c0_i32 = arith.constant 0 : i32
    %c0_i32_0 = arith.constant 0 : i32
    return %arg0, %arg1, %c0_i32 : i32, i32, i32
  }
}

</mosaic_0001>

<bundles_post_ra>
// kernel: tpu_custom_call.1
= control target key start
LH: loop header
LB: loop body
LE: loop exit
PB: predicated region body
PF: predicated region fallthrough
CT: control target
= control target key end

     0   :  { %7 = vsyncpa [#allocation4], 0  ;;  %s3394_s0 = inlined_call_operand.vmem [shape: bf16[2,8,256,3], index: 0, kind: input, shape index: {}]   ;;  %s3395_s1 = inlined_call_operand.vmem [shape: bf16[3,512], index: 1, kind: input, shape index: {}]   ;;  %s3396_s2 = inlined_call_operand.hbm [shape: f32[2,256,128], index: 2, kind: output, shape index: {}]  }
   0x1   :  { %9 = vsyncpa [#allocation4 + $0x1], 0  ;;  %s2519_s9 = smov 0   ;;  %s2521_s10 = smov 0  }
   0x2   :  { %s2523_s11 = smov 0   ;;  %s2525_s12 = smov 0  }
   0x3   :  { %s2527_s13 = smov 0   ;;  %s2529_s14 = smov 0  }
   0x4   :  { %s2531_s15 = smov 0   ;;  %s2533_s16 = smov 0  }
   0x5 LB: > { %s2180_s17 = sadd.s32 4294967295, %s2496_s16   ;;  %s2181_s18 = sadd.s32 4294967294, %s2496_s16   ;;  %s2496_s16 = sphi %s2533_s16, %s15_s16   ;;  %s2492_s15 = sphi %s2531_s15, %s3418_s15   ;;  %s2488_s14 = sphi %s2529_s14, %s3417_s14   ;;  %s2484_s13 = sphi %s2527_s13, %s3416_s13   ;;  %s2480_s12 = sphi %s2525_s12, %s3415_s12   ;;  %s2476_s11 = sphi %s2523_s11, %s3414_s11   ;;  %s2472_s10 = sphi %s2521_s10, %s3413_s10   ;;  %s2468_s9 = sphi %s2519_s9, %s3412_s9  }
   0x6   : > { %s24_s19 = sadd.s32 1, %s2488_s14  ;;  %s27_s20 = sadd.s32 1, %s2492_s15 }
   0x7   : > { %p25_p0 = scmp.ge.s32.totalorder %s24_s19, 4  ;;  %p43_p1 = scmp.ne.s32.totalorder %s2476_s11, %s2472_s10 }
   0x8   : > { %p44_p2 = scmp.eq.s32.totalorder %s2496_s16, 0  ;;  %p96_p5 = scmp.eq.s32.totalorder %s2180_s17, 7 }
   0x9   : > { %s3420_s19 = smov (%p25_p0, %s24_s19), 0  ;;  %s3422_s20 = smov (!%p25_p0, %s27_s20), %s2492_s15 }
   0xa   : > { %s32_s21 = ssub.s32 %s2488_s14, %s3420_s19  ;;  %p2571_p3 = por %p44_p2, %p43_p1 }
   0xb   : > { %p29_p4 = scmp.ge.s32.totalorder %s3422_s20, 2  ;;  %p101_p6 = scmp.ne.s32.totalorder %s2472_s10, %s2468_s9 }
   0xc   : > { %p102_p7 = scmp.eq.s32.totalorder %s2181_s18, 7  ;;  %p2579_p8 = por %p96_p5, %p43_p1 }
   0xd   : > { %s3424_s20 = smov (%p29_p4, %s3422_s20), 0  ;;  %s36_s27 = sadd.s32 1, %s2476_s11 }
   0xe   : > { %p2583_p9 = por %p102_p7, %p101_p6  ;;  %s31_s25 = ssub.s32 %s2492_s15, %s3424_s20 }
   0xf   : > { %s33_s26 = sor.u32 %s32_s21, %s31_s25  ;;  %p2183_p11 = scmp.ge.s32.totalorder %s2496_s16, 8 }
  0x10   : > { %p34_p10 = scmp.eq.s32.totalorder %s33_s26, 0 }
  0x11   : > { %121 = sbr.rel (%p2183_p11) target bundleno = 47 (0x2f), region = 20 }
  0x12   : > { %s2591_s28 = scalar_select %p34_p10, %s2476_s11, %s36_s27  }
  0x18   : > { %124 = sbr.rel (!%p2571_p3) target bundleno = 47 (0x2f), region = 24  ;;  %s126_s29 = sand.u32 (%p2571_p3), 1, %s2476_s11  }
  0x19   : > { %s2185_s30 = sshll.u32 (%p2571_p3), %s2488_s14, 3  ;;  %s2184_s3 = sshll.u32 (%p2571_p3), %s126_s29, 8 }
  0x1a   : > { %s2186_s4 = sshll.u32 (%p2571_p3), %s2492_s15, 8  ;;  %s2607_s18 = scalar_lea.vmem (%p2571_p3), [#allocation2], %s2184_s3 }
  0x1b   : > { %s131_s5 = sadd.s32 (%p2571_p3), %s2186_s4, %s2185_s30 }
  0x1c   : > { %s2187_s6 = sshll.u32 (%p2571_p3), %s131_s5, 2 }
  0x1d   : > { %s2602_s17 = scalar_lea.vmem (%p2571_p3), %s3394_s0, %s2187_s6 }
  0x1e   : > { %v149_v0 = vld [vmem:[%s2602_s17] sm:$0xff] (%p2571_p3)   ;;  %v153_v1 = vld [vmem:[%s2602_s17 + $0x8] sm:$0xff] (%p2571_p3)   ;;  %v157_v2 = vld [vmem:[%s2602_s17 + $0x10] sm:$0xff] (%p2571_p3)  }
  0x1f   : > { %150 = vst [vmem:[%s2607_s18] sm:$0xff] %v149_v0   ;;  %154 = vst [vmem:[%s2607_s18 + $0x8] sm:$0xff] %v153_v1   ;;  %v161_v3 = vld [vmem:[%s2602_s17 + $0x18] sm:$0xff]   ;;  %v165_v4 = vld [vmem:[%s2602_s17 + $0x80] sm:$0xff]  }
  0x20   : > { %158 = vst [vmem:[%s2607_s18 + $0x10] sm:$0xff] %v157_v2   ;;  %v169_v5 = vld [vmem:[%s2602_s17 + $0x88] sm:$0xff]   ;;  %162 = vst [vmem:[%s2607_s18 + $0x18] sm:$0xff] %v161_v3   ;;  %v173_v6 = vld [vmem:[%s2602_s17 + $0x90] sm:$0xff]  }
  0x21   : > { %166 = vst [vmem:[%s2607_s18 + $0x20] sm:$0xff] %v165_v4   ;;  %170 = vst [vmem:[%s2607_s18 + $0x28] sm:$0xff] %v169_v5   ;;  %v177_v7 = vld [vmem:[%s2602_s17 + $0x98] sm:$0xff]   ;;  %v181_v8 = vld [vmem:[%s2602_s17 + $0x100] sm:$0xff]  }
  0x22   : > { %174 = vst [vmem:[%s2607_s18 + $0x30] sm:$0xff] %v173_v6   ;;  %178 = vst [vmem:[%s2607_s18 + $0x38] sm:$0xff] %v177_v7   ;;  %v185_v9 = vld [vmem:[%s2602_s17 + $0x108] sm:$0xff]   ;;  %v189_v10 = vld [vmem:[%s2602_s17 + $0x110] sm:$0xff]  }
  0x23   : > { %182 = vst [vmem:[%s2607_s18 + $0x40] sm:$0xff] %v181_v8   ;;  %v193_v11 = vld [vmem:[%s2602_s17 + $0x118] sm:$0xff]   ;;  %186 = vst [vmem:[%s2607_s18 + $0x48] sm:$0xff] %v185_v9   ;;  %v197_v12 = vld [vmem:[%s2602_s17 + $0x180] sm:$0xff]  }
  0x24   : > { %190 = vst [vmem:[%s2607_s18 + $0x50] sm:$0xff] %v189_v10   ;;  %194 = vst [vmem:[%s2607_s18 + $0x58] sm:$0xff] %v193_v11   ;;  %v201_v13 = vld [vmem:[%s2602_s17 + $0x188] sm:$0xff]   ;;  %v205_v14 = vld [vmem:[%s2602_s17 + $0x190] sm:$0xff]  }
  0x25   : > { %198 = vst [vmem:[%s2607_s18 + $0x60] sm:$0xff] %v197_v12   ;;  %202 = vst [vmem:[%s2607_s18 + $0x68] sm:$0xff] %v201_v13   ;;  %v209_v15 = vld [vmem:[%s2602_s17 + $0x198] sm:$0xff]   ;;  %v213_v16 = vld [vmem:[%s2602_s17 + $0x200] sm:$0xff]  }
  0x26   : > { %206 = vst [vmem:[%s2607_s18 + $0x70] sm:$0xff] %v205_v14   ;;  %v217_v17 = vld [vmem:[%s2602_s17 + $0x208] sm:$0xff]   ;;  %210 = vst [vmem:[%s2607_s18 + $0x78] sm:$0xff] %v209_v15   ;;  %v221_v18 = vld [vmem:[%s2602_s17 + $0x210] sm:$0xff]  }
  0x27   : > { %214 = vst [vmem:[%s2607_s18 + $0x80] sm:$0xff] %v213_v16   ;;  %218 = vst [vmem:[%s2607_s18 + $0x88] sm:$0xff] %v217_v17   ;;  %v225_v19 = vld [vmem:[%s2602_s17 + $0x218] sm:$0xff]   ;;  %v229_v20 = vld [vmem:[%s2602_s17 + $0x280] sm:$0xff]  }
  0x28   : > { %222 = vst [vmem:[%s2607_s18 + $0x90] sm:$0xff] %v221_v18   ;;  %226 = vst [vmem:[%s2607_s18 + $0x98] sm:$0xff] %v225_v19   ;;  %v233_v21 = vld [vmem:[%s2602_s17 + $0x288] sm:$0xff]   ;;  %v237_v22 = vld [vmem:[%s2602_s17 + $0x290] sm:$0xff]  }
  0x29   : > { %230 = vst [vmem:[%s2607_s18 + $0xa0] sm:$0xff] %v229_v20   ;;  %v241_v23 = vld [vmem:[%s2602_s17 + $0x298] sm:$0xff]   ;;  %234 = vst [vmem:[%s2607_s18 + $0xa8] sm:$0xff] %v233_v21   ;;  %v245_v24 = vld [vmem:[%s2602_s17 + $0x300] sm:$0xff]  }
  0x2a   : > { %238 = vst [vmem:[%s2607_s18 + $0xb0] sm:$0xff] %v237_v22   ;;  %242 = vst [vmem:[%s2607_s18 + $0xb8] sm:$0xff] %v241_v23   ;;  %v249_v25 = vld [vmem:[%s2602_s17 + $0x308] sm:$0xff]   ;;  %v253_v26 = vld [vmem:[%s2602_s17 + $0x310] sm:$0xff]  }
  0x2b   : > { %246 = vst [vmem:[%s2607_s18 + $0xc0] sm:$0xff] %v245_v24   ;;  %250 = vst [vmem:[%s2607_s18 + $0xc8] sm:$0xff] %v249_v25   ;;  %v257_v27 = vld [vmem:[%s2602_s17 + $0x318] sm:$0xff]   ;;  %v261_v28 = vld [vmem:[%s2602_s17 + $0x380] sm:$0xff]  }
  0x2c   : > { %254 = vst [vmem:[%s2607_s18 + $0xd0] sm:$0xff] %v253_v26   ;;  %v265_v29 = vld [vmem:[%s2602_s17 + $0x388] sm:$0xff]   ;;  %258 = vst [vmem:[%s2607_s18 + $0xd8] sm:$0xff] %v257_v27   ;;  %v269_v30 = vld [vmem:[%s2602_s17 + $0x390] sm:$0xff]  }
  0x2d   : > { %262 = vst [vmem:[%s2607_s18 + $0xe0] sm:$0xff] %v261_v28   ;;  %266 = vst [vmem:[%s2607_s18 + $0xe8] sm:$0xff] %v265_v29   ;;  %v273_v31 = vld [vmem:[%s2602_s17 + $0x398] sm:$0xff]  }
  0x2e   : > { %270 = vst [vmem:[%s2607_s18 + $0xf0] sm:$0xff] %v269_v30   ;;  %274 = vst [vmem:[%s2607_s18 + $0xf8] sm:$0xff] %v273_v31  }
  0x2f PF: > { %p2188_p12 = scmp.ge.s32.totalorder %s2496_s16, 1  ;;  %p426_p13 = scmp.lt.s32.totalorder %s2496_s16, 9 }
  0x31   : > { %p427_p0 = pnand %p2188_p12, %p426_p13 }
  0x32   : > { %v521_v32 = vld [vmem:[%s3395_s1] sm:$0xff] (!%p427_p0)  ;;  %v687_v33 = vlaneseq (!%p427_p0)  ;;  %s2676_s25 = sand.u32 (!%p427_p0), 1, %s2472_s10   ;;  %v2498_v34 = vmov (!%p427_p0), 1983009808   ;;  %vm797_vm0 = vcmask (!%p427_p0), 1040384   ;;  %v2499_v37 = vmov (!%p427_p0), 0  }
  0x33   : > { %430 = sbr.rel (%p427_p0) target bundleno = 560 (0x230), region = 65  ;;  %v685_v35 = vunpack.c.l.s4 (!%p427_p0), %v2498_v34  ;;  %s2189_s26 = sshll.u32 (!%p427_p0), %s2676_s25, 8  ;;  %845 = vmatprep.mubr.bf16.mxu0 (!%p427_p0), %v2499_v37  ;;  %1198 = vmatprep.mubr.bf16.mxu1 (!%p427_p0), %v2499_v37  ;;  %v683_v39 = vcombine.high (!%p427_p0), %v521_v32, %v521_v32  ;;  %vm798_vm1 = vcmask (!%p427_p0), 1041408   ;;  %v2500_v40 = vmov (!%p427_p0), 65535  }
  0x34   : > { %v688_v36 = vshrl.u32 (!%p427_p0), %v687_v33, 7  ;;  %s2681_s27 = scalar_lea.vmem (!%p427_p0), [#allocation2], %s2189_s26  ;;  %v799_v41 = vsel (!%p427_p0), %vm797_vm0, 4294967295, %v2500_v40  ;;  %vm700_vm2 = vcmask (!%p427_p0), 23552   ;;  %s2190_s29 = sshll.u32 (!%p427_p0), %s2676_s25, 6 }
  0x35   : > { %v686_v38 = vunpack.c.0.s8 (!%p427_p0), %v685_v35  ;;  %v800_v44 = vsel (!%p427_p0), %vm798_vm1, %v799_v41, 0  ;;  %v2370_v52 = vld [vmem:[%s2681_s27] sm:$0xff] (!%p427_p0)   ;;  %v2371_v53 = vld [vmem:[%s2681_s27 + $0x8] sm:$0xff] (!%p427_p0)   ;;  %v2372_v54 = vld [vmem:[%s2681_s27 + $0x10] sm:$0xff] (!%p427_p0)   ;;  %s3314_s30 = scalar_lea.vmem (!%p427_p0), [#allocation3], %s2190_s29  ;;  %s2288_s3 = sshll.u32 (!%p427_p0), %s2480_s12, 3 }
  0x36   : > { %v2373_v55 = vld [vmem:[%s2681_s27 + $0x18] sm:$0xff] (!%p427_p0)   ;;  %v2374_v56 = vld [vmem:[%s2681_s27 + $0x20] sm:$0xff] (!%p427_p0)   ;;  %v2375_v57 = vld [vmem:[%s2681_s27 + $0x28] sm:$0xff] (!%p427_p0)   ;;  %s2289_s4 = sshll.u32 (!%p427_p0), %s2484_s13, 5  ;;  %s2095_s13 = sshll.u32 (!%p427_p0), %s3314_s30, 4  ;;  %s3338_s13 = int_to_ptr.vmem [resolvable:$true] %s2095_s13 }
  0x37   : > { %v689_v42 = vsub.s32 (!%p427_p0), %v686_v38, %v688_v36  ;;  %v2376_v58 = vld [vmem:[%s2681_s27 + $0x30] sm:$0xff] (!%p427_p0)   ;;  %v2377_v59 = vld [vmem:[%s2681_s27 + $0x38] sm:$0xff] (!%p427_p0)   ;;  %v2378_v60 = vld [vmem:[%s2681_s27 + $0x40] sm:$0xff] (!%p427_p0)   ;;  %s2092_s5 = sadd.s32 (!%p427_p0), %s2289_s4, %s2288_s3  ;;  %s2080_s17 = scalar_lea.sflag (!%p427_p0), [#allocation4], %s2676_s25 }
  0x38   : > { %v2379_v61 = vld [vmem:[%s2681_s27 + $0x48] sm:$0xff] (!%p427_p0)   ;;  %v2380_v62 = vld [vmem:[%s2681_s27 + $0x50] sm:$0xff] (!%p427_p0)   ;;  %v2381_v63 = vld [vmem:[%s2681_s27 + $0x58] sm:$0xff] (!%p427_p0)   ;;  %s2290_s12 = sshll.u32 (!%p427_p0), %s2092_s5, 7  ;;  %s2402_s18 = scalar_lea.vmem (!%p427_p0), %s3338_s13, 1024 }
  0x39   : > { %v690_v43 = vrot.slane (!%p427_p0), %v521_v32, %v689_v42  ;;  %v697_v45 = vrot.slane (!%p427_p0), %v683_v39, %v689_v42  ;;  %v2382_v0 = vld [vmem:[%s2681_s27 + $0x60] sm:$0xff] (!%p427_p0)   ;;  %v2383_v1 = vld [vmem:[%s2681_s27 + $0x68] sm:$0xff] (!%p427_p0)   ;;  %v2384_v2 = vld [vmem:[%s2681_s27 + $0x70] sm:$0xff] (!%p427_p0)   ;;  %s3336_s8 = scalar_lea.hbm (!%p427_p0), %s3396_s2, %s2290_s12  ;;  %p2403_p1 = scmp.ne.s32.totalorder (!%p427_p0), %s3338_s13, %s2402_s18 }
  0x3a   : > { %v2385_v3 = vld [vmem:[%s2681_s27 + $0x78] sm:$0xff]   ;;  %v2386_v4 = vld [vmem:[%s2681_s27 + $0x80] sm:$0xff]   ;;  %v2387_v5 = vld [vmem:[%s2681_s27 + $0x88] sm:$0xff]   ;;  %s2501_s21 = smov [#allocation3]  }
  0x3b   : > { %v698_v46 = vcombine.high %v690_v43, %v690_v43  ;;  %v699_v47 = vcombine.high %v697_v45, %v697_v45  ;;  %v802_v48 = vand.u32 %v800_v44, %v690_v43  ;;  %v808_v49 = vand.u32 %v800_v44, %v697_v45  ;;  %v2388_v6 = vld [vmem:[%s2681_s27 + $0x90] sm:$0xff]   ;;  %v2389_v7 = vld [vmem:[%s2681_s27 + $0x98] sm:$0xff]   ;;  %v2390_v8 = vld [vmem:[%s2681_s27 + $0xa0] sm:$0xff]   ;;  %p2404_p2 = pnand %p2403_p1, %p2579_p8  ;;  %s2406_s22 = sshll.u32 %s2501_s21, 4  ;;  %s2407_s22 = int_to_ptr.vmem [resolvable:$false] %s2406_s22 }
  0x3c   : > { %v2391_v9 = vld [vmem:[%s2681_s27 + $0xa8] sm:$0xff]   ;;  %v2392_v10 = vld [vmem:[%s2681_s27 + $0xb0] sm:$0xff]   ;;  %v2393_v11 = vld [vmem:[%s2681_s27 + $0xb8] sm:$0xff]   ;;  %s2408_s26 = scalar_lea.vmem %s2407_s22, 2048  ;;  %p2409_p4 = scmp.lt.s32.totalorder %s3338_s13, %s2407_s22 }
  0x3d   : > { %v805_v50 = vand.u32 %v800_v44, %v698_v46  ;;  %v811_v51 = vand.u32 %v800_v44, %v699_v47  ;;  %v2394_v12 = vld [vmem:[%s2681_s27 + $0xc0] sm:$0xff]   ;;  %v2395_v13 = vld [vmem:[%s2681_s27 + $0xc8] sm:$0xff]   ;;  %v2396_v14 = vld [vmem:[%s2681_s27 + $0xd0] sm:$0xff]   ;;  %p2405_p3 = pneg %p2404_p2  ;;  %p2410_p5 = scmp.lt.s32.totalorder %s2408_s26, %s2402_s18 }
  0x3e   : > { %v2397_v20 = vld [vmem:[%s2681_s27 + $0xd8] sm:$0xff]   ;;  %v2398_v42 = vld [vmem:[%s2681_s27 + $0xe0] sm:$0xff]  }
  0x3f   : > { %813 = vmatprep.subr.bf16.mxu0 %v805_v50  ;;  %1166 = vmatprep.subr.bf16.mxu1 %v811_v51  ;;  %p2411_p6 = por %p2410_p5, %p2409_p4 }
  0x40   : > { %814 = vmatpush1.bf16.msra.mxu0 %v802_v48  ;;  %1167 = vmatpush1.bf16.msra.mxu1 %v808_v49 }
  0x41   : > { %p2412_p7 = pnand %p2411_p6, %p2405_p3 }
  0x43   : > { %2223 = vmatmul.mubr.msk.bf16.vlgmr.msra.gmra.mrb[0].mxu0 %vm700_vm2, %v2370_v52  ;;  %2255 = vmatmul.mubr.msk.bf16.vlgmr.msra.gmra.mrb[0].mxu1 %vm700_vm2, %v2370_v52 }
  0x44   : > { %855 = vmatprep.mubr.bf16.mxu0 %v2499_v37  ;;  %1208 = vmatprep.mubr.bf16.mxu1 %v2499_v37 }
  0x4b   : > { %2224 = vmatmul.mubr.msk.bf16.gmra.mrb[4].mxu0 %vm700_vm2, %v2371_v53  ;;  %2256 = vmatmul.mubr.msk.bf16.gmra.mrb[4].mxu1 %vm700_vm2, %v2371_v53 }
  0x4c   : > { %865 = vmatprep.mubr.bf16.mxu0 %v2499_v37  ;;  %1218 = vmatprep.mubr.bf16.mxu1 %v2499_v37 }
  0x53   : > { %2225 = vmatmul.mubr.msk.bf16.gmra.mrb[8].mxu0 %vm700_vm2, %v2372_v54  ;;  %2257 = vmatmul.mubr.msk.bf16.gmra.mrb[8].mxu1 %vm700_vm2, %v2372_v54 }
  0x54   : > { %875 = vmatprep.mubr.bf16.mxu0 %v2499_v37  ;;  %1228 = vmatprep.mubr.bf16.mxu1 %v2499_v37 }
  0x5b   : > { %2226 = vmatmul.mubr.msk.bf16.gmra.mrb[12].mxu0 %vm700_vm2, %v2373_v55  ;;  %2258 = vmatmul.mubr.msk.bf16.gmra.mrb[12].mxu1 %vm700_vm2, %v2373_v55 }
  0x5c   : > { %885 = vmatprep.mubr.bf16.mxu0 %v2499_v37  ;;  %1238 = vmatprep.mubr.bf16.mxu1 %v2499_v37 }
  0x63   : > { %2227 = vmatmul.mubr.msk.bf16.gmra.mrb[16].mxu0 %vm700_vm2, %v2374_v56  ;;  %2259 = vmatmul.mubr.msk.bf16.gmra.mrb[16].mxu1 %vm700_vm2, %v2374_v56 }
  0x64   : > { %895 = vmatprep.mubr.bf16.mxu0 %v2499_v37  ;;  %1248 = vmatprep.mubr.bf16.mxu1 %v2499_v37 }
  0x6b   : > { %2228 = vmatmul.mubr.msk.bf16.gmra.mrb[20].mxu0 %vm700_vm2, %v2375_v57  ;;  %2260 = vmatmul.mubr.msk.bf16.gmra.mrb[20].mxu1 %vm700_vm2, %v2375_v57 }
  0x6c   : > { %905 = vmatprep.mubr.bf16.mxu0 %v2499_v37  ;;  %1258 = vmatprep.mubr.bf16.mxu1 %v2499_v37 }
  0x73   : > { %2229 = vmatmul.mubr.msk.bf16.gmra.mrb[24].mxu0 %vm700_vm2, %v2376_v58  ;;  %2261 = vmatmul.mubr.msk.bf16.gmra.mrb[24].mxu1 %vm700_vm2, %v2376_v58 }
  0x74   : > { %915 = vmatprep.mubr.bf16.mxu0 %v2499_v37  ;;  %1268 = vmatprep.mubr.bf16.mxu1 %v2499_v37 }
  0x7b   : > { %2230 = vmatmul.mubr.msk.bf16.gmra.mrb[28].mxu0 %vm700_vm2, %v2377_v59  ;;  %2262 = vmatmul.mubr.msk.bf16.gmra.mrb[28].mxu1 %vm700_vm2, %v2377_v59 }
  0x7c   : > { %925 = vmatprep.mubr.bf16.mxu0 %v2499_v37  ;;  %1278 = vmatprep.mubr.bf16.mxu1 %v2499_v37 }
  0x83   : > { %2231 = vmatmul.mubr.msk.bf16.gmra.mrb[32].mxu0 %vm700_vm2, %v2378_v60  ;;  %2263 = vmatmul.mubr.msk.bf16.gmra.mrb[32].mxu1 %vm700_vm2, %v2378_v60 }
  0x84   : > { %935 = vmatprep.mubr.bf16.mxu0 %v2499_v37  ;;  %1288 = vmatprep.mubr.bf16.mxu1 %v2499_v37 }
  0x8b   : > { %2232 = vmatmul.mubr.msk.bf16.gmra.mrb[36].mxu0 %vm700_vm2, %v2379_v61  ;;  %2264 = vmatmul.mubr.msk.bf16.gmra.mrb[36].mxu1 %vm700_vm2, %v2379_v61 }
  0x8c   : > { %945 = vmatprep.mubr.bf16.mxu0 %v2499_v37  ;;  %1298 = vmatprep.mubr.bf16.mxu1 %v2499_v37 }
  0x93   : > { %2233 = vmatmul.mubr.msk.bf16.gmra.mrb[40].mxu0 %vm700_vm2, %v2380_v62  ;;  %2265 = vmatmul.mubr.msk.bf16.gmra.mrb[40].mxu1 %vm700_vm2, %v2380_v62 }
  0x94   : > { %955 = vmatprep.mubr.bf16.mxu0 %v2499_v37  ;;  %1308 = vmatprep.mubr.bf16.mxu1 %v2499_v37 }
  0x9b   : > { %2234 = vmatmul.mubr.msk.bf16.gmra.mrb[44].mxu0 %vm700_vm2, %v2381_v63  ;;  %2266 = vmatmul.mubr.msk.bf16.gmra.mrb[44].mxu1 %vm700_vm2, %v2381_v63  ;;  %v2399_v63 = vld [vmem:[%s2681_s27 + $0xe8] sm:$0xff]  }
  0x9c   : > { %965 = vmatprep.mubr.bf16.mxu0 %v2499_v37  ;;  %1318 = vmatprep.mubr.bf16.mxu1 %v2499_v37 }
  0xa3   : > { %2235 = vmatmul.mubr.msk.bf16.gmra.mrb[48].mxu0 %vm700_vm2, %v2382_v0  ;;  %2267 = vmatmul.mubr.msk.bf16.gmra.mrb[48].mxu1 %vm700_vm2, %v2382_v0 }
  0xa4   : > { %975 = vmatprep.mubr.bf16.mxu0 %v2499_v37  ;;  %1328 = vmatprep.mubr.bf16.mxu1 %v2499_v37 }
  0xab   : > { %2236 = vmatmul.mubr.msk.bf16.gmra.mrb[52].mxu0 %vm700_vm2, %v2383_v1  ;;  %2268 = vmatmul.mubr.msk.bf16.gmra.mrb[52].mxu1 %vm700_vm2, %v2383_v1 }
  0xac   : > { %985 = vmatprep.mubr.bf16.mxu0 %v2499_v37  ;;  %1338 = vmatprep.mubr.bf16.mxu1 %v2499_v37 }
  0xb3   : > { %2237 = vmatmul.mubr.msk.bf16.gmra.mrb[56].mxu0 %vm700_vm2, %v2384_v2  ;;  %2269 = vmatmul.mubr.msk.bf16.gmra.mrb[56].mxu1 %vm700_vm2, %v2384_v2 }
  0xb4   : > { %995 = vmatprep.mubr.bf16.mxu0 %v2499_v37  ;;  %1348 = vmatprep.mubr.bf16.mxu1 %v2499_v37 }
  0xbb   : > { %2238 = vmatmul.mubr.msk.bf16.gmra.mrb[60].mxu0 %vm700_vm2, %v2385_v3  ;;  %2270 = vmatmul.mubr.msk.bf16.gmra.mrb[60].mxu1 %vm700_vm2, %v2385_v3 }
  0xbc   : > { %1005 = vmatprep.mubr.bf16.mxu0 %v2499_v37  ;;  %1358 = vmatprep.mubr.bf16.mxu1 %v2499_v37 }
  0xc3   : > { %2239 = vmatmul.mubr.msk.bf16.gmra.mrb[64].mxu0 %vm700_vm2, %v2386_v4  ;;  %2271 = vmatmul.mubr.msk.bf16.gmra.mrb[64].mxu1 %vm700_vm2, %v2386_v4 }
  0xc4   : > { %1015 = vmatprep.mubr.bf16.mxu0 %v2499_v37  ;;  %1368 = vmatprep.mubr.bf16.mxu1 %v2499_v37 }
  0xcb   : > { %2240 = vmatmul.mubr.msk.bf16.gmra.mrb[68].mxu0 %vm700_vm2, %v2387_v5  ;;  %2272 = vmatmul.mubr.msk.bf16.gmra.mrb[68].mxu1 %vm700_vm2, %v2387_v5 }
  0xcc   : > { %1025 = vmatprep.mubr.bf16.mxu0 %v2499_v37  ;;  %1378 = vmatprep.mubr.bf16.mxu1 %v2499_v37 }
  0xd3   : > { %2241 = vmatmul.mubr.msk.bf16.gmra.mrb[72].mxu0 %vm700_vm2, %v2388_v6  ;;  %2273 = vmatmul.mubr.msk.bf16.gmra.mrb[72].mxu1 %vm700_vm2, %v2388_v6 }
  0xd4   : > { %1035 = vmatprep.mubr.bf16.mxu0 %v2499_v37  ;;  %1388 = vmatprep.mubr.bf16.mxu1 %v2499_v37 }
  0xdb   : > { %2242 = vmatmul.mubr.msk.bf16.gmra.mrb[76].mxu0 %vm700_vm2, %v2389_v7  ;;  %2274 = vmatmul.mubr.msk.bf16.gmra.mrb[76].mxu1 %vm700_vm2, %v2389_v7 }
  0xdc   : > { %1045 = vmatprep.mubr.bf16.mxu0 %v2499_v37  ;;  %1398 = vmatprep.mubr.bf16.mxu1 %v2499_v37 }
  0xe3   : > { %2243 = vmatmul.mubr.msk.bf16.gmra.mrb[80].mxu0 %vm700_vm2, %v2390_v8  ;;  %2275 = vmatmul.mubr.msk.bf16.gmra.mrb[80].mxu1 %vm700_vm2, %v2390_v8 }
  0xe4   : > { %1055 = vmatprep.mubr.bf16.mxu0 %v2499_v37  ;;  %1408 = vmatprep.mubr.bf16.mxu1 %v2499_v37 }
  0xeb   : > { %2244 = vmatmul.mubr.msk.bf16.gmra.mrb[84].mxu0 %vm700_vm2, %v2391_v9  ;;  %2276 = vmatmul.mubr.msk.bf16.gmra.mrb[84].mxu1 %vm700_vm2, %v2391_v9 }
  0xec   : > { %1065 = vmatprep.mubr.bf16.mxu0 %v2499_v37  ;;  %1418 = vmatprep.mubr.bf16.mxu1 %v2499_v37 }
  0xf3   : > { %2245 = vmatmul.mubr.msk.bf16.gmra.mrb[88].mxu0 %vm700_vm2, %v2392_v10  ;;  %2277 = vmatmul.mubr.msk.bf16.gmra.mrb[88].mxu1 %vm700_vm2, %v2392_v10 }
  0xf4   : > { %1075 = vmatprep.mubr.bf16.mxu0 %v2499_v37  ;;  %1428 = vmatprep.mubr.bf16.mxu1 %v2499_v37 }
  0xfb   : > { %2246 = vmatmul.mubr.msk.bf16.gmra.mrb[92].mxu0 %vm700_vm2, %v2393_v11  ;;  %2278 = vmatmul.mubr.msk.bf16.gmra.mrb[92].mxu1 %vm700_vm2, %v2393_v11 }
  0xfc   : > { %1085 = vmatprep.mubr.bf16.mxu0 %v2499_v37  ;;  %1438 = vmatprep.mubr.bf16.mxu1 %v2499_v37 }
 0x103   : > { %2247 = vmatmul.mubr.msk.bf16.gmra.mrb[96].mxu0 %vm700_vm2, %v2394_v12  ;;  %2279 = vmatmul.mubr.msk.bf16.gmra.mrb[96].mxu1 %vm700_vm2, %v2394_v12 }
 0x104   : > { %1095 = vmatprep.mubr.bf16.mxu0 %v2499_v37  ;;  %1448 = vmatprep.mubr.bf16.mxu1 %v2499_v37 }
 0x10b   : > { %2248 = vmatmul.mubr.msk.bf16.gmra.mrb[100].mxu0 %vm700_vm2, %v2395_v13  ;;  %2280 = vmatmul.mubr.msk.bf16.gmra.mrb[100].mxu1 %vm700_vm2, %v2395_v13 }
 0x10c   : > { %1105 = vmatprep.mubr.bf16.mxu0 %v2499_v37  ;;  %1458 = vmatprep.mubr.bf16.mxu1 %v2499_v37 }
 0x113   : > { %2249 = vmatmul.mubr.msk.bf16.gmra.mrb[104].mxu0 %vm700_vm2, %v2396_v14  ;;  %2281 = vmatmul.mubr.msk.bf16.gmra.mrb[104].mxu1 %vm700_vm2, %v2396_v14 }
 0x114   : > { %1115 = vmatprep.mubr.bf16.mxu0 %v2499_v37  ;;  %1468 = vmatprep.mubr.bf16.mxu1 %v2499_v37 }
 0x116   : > { %v847_v15 = vpop.f32.mrb[0].mxu0  ;;  %v1200_v16 = vpop.f32.mrb[0].mxu1 }
 0x117   : > { %v1521_v17 = vmax.f32 %v1200_v16, 0.0  ;;  %v849_v18 = vpop.f32.mrb[1].mxu0  ;;  %v1202_v19 = vpop.f32.mrb[1].mxu1  ;;  %v1519_v24 = vmax.f32 %v847_v15, 0.0 }
 0x118   : > { %v1522_v21 = vmax.f32 %v1202_v19, 0.0  ;;  %v851_v22 = vpop.f32.mrb[2].mxu0  ;;  %v1204_v23 = vpop.f32.mrb[2].mxu1  ;;  %v1520_v29 = vmax.f32 %v849_v18, 0.0 }
 0x119   : > { %v1523_v25 = vmax.f32 %v851_v22, 0.0  ;;  %v1525_v26 = vmax.f32 %v1204_v23, 0.0  ;;  %v853_v27 = vpop.f32.mrb[3].mxu0  ;;  %v1206_v28 = vpop.f32.mrb[3].mxu1 }
 0x11a   : > { %v1524_v30 = vmax.f32 %v853_v27, 0.0  ;;  %v1526_v31 = vmax.f32 %v1206_v28, 0.0 }
 0x11b   : > { %v2819_v32 = vpack.c.bf16 %v1523_v25, %v1519_v24  ;;  %v2821_v33 = vpack.c.bf16 %v1525_v26, %v1521_v17  ;;  %2250 = vmatmul.mubr.msk.bf16.gmra.mrb[108].mxu0 %vm700_vm2, %v2397_v20  ;;  %2282 = vmatmul.mubr.msk.bf16.gmra.mrb[108].mxu1 %vm700_vm2, %v2397_v20  ;;  %v2400_v20 = vld [vmem:[%s2681_s27 + $0xf0] sm:$0xff]  }
 0x11c   : > { %v2825_v34 = vpack.c.bf16 %v1524_v30, %v1520_v29  ;;  %v2827_v35 = vpack.c.bf16 %v1526_v31, %v1522_v21  ;;  %1125 = vmatprep.mubr.bf16.mxu0 %v2499_v37  ;;  %1478 = vmatprep.mubr.bf16.mxu1 %v2499_v37 }
 0x11e   : > { %v857_v36 = vpop.f32.mrb[4].mxu0  ;;  %v1210_v38 = vpop.f32.mrb[4].mxu1 }
 0x11f   : > { %v1529_v39 = vmax.f32 %v1210_v38, 0.0  ;;  %v859_v40 = vpop.f32.mrb[5].mxu0  ;;  %v1212_v41 = vpop.f32.mrb[5].mxu1  ;;  %v1527_v46 = vmax.f32 %v857_v36, 0.0 }
 0x120   : > { %v1530_v43 = vmax.f32 %v1212_v41, 0.0  ;;  %v861_v44 = vpop.f32.mrb[6].mxu0  ;;  %v1214_v45 = vpop.f32.mrb[6].mxu1  ;;  %v1528_v51 = vmax.f32 %v859_v40, 0.0 }
 0x121   : > { %v1531_v47 = vmax.f32 %v861_v44, 0.0  ;;  %v1533_v48 = vmax.f32 %v1214_v45, 0.0  ;;  %v863_v49 = vpop.f32.mrb[7].mxu0  ;;  %v1216_v50 = vpop.f32.mrb[7].mxu1 }
 0x122   : > { %v1532_v52 = vmax.f32 %v863_v49, 0.0  ;;  %v1534_v53 = vmax.f32 %v1216_v50, 0.0 }
 0x123   : > { %v2832_v54 = vpack.c.bf16 %v1531_v47, %v1527_v46  ;;  %v2834_v55 = vpack.c.bf16 %v1533_v48, %v1529_v39  ;;  %2251 = vmatmul.mubr.msk.bf16.gmra.mrb[112].mxu0 %vm700_vm2, %v2398_v42  ;;  %2283 = vmatmul.mubr.msk.bf16.gmra.mrb[112].mxu1 %vm700_vm2, %v2398_v42  ;;  %v2401_v46 = vld [vmem:[%s2681_s27 + $0xf8] sm:$0xff]  }
 0x124   : > { %v2838_v56 = vpack.c.bf16 %v1532_v52, %v1528_v51  ;;  %v2840_v57 = vpack.c.bf16 %v1534_v53, %v1530_v43  ;;  %1135 = vmatprep.mubr.bf16.mxu0 %v2499_v37  ;;  %1488 = vmatprep.mubr.bf16.mxu1 %v2499_v37 }
 0x126   : > { %v867_v58 = vpop.f32.mrb[8].mxu0  ;;  %v1220_v59 = vpop.f32.mrb[8].mxu1 }
 0x127   : > { %v1537_v60 = vmax.f32 %v1220_v59, 0.0  ;;  %v869_v61 = vpop.f32.mrb[9].mxu0  ;;  %v1222_v62 = vpop.f32.mrb[9].mxu1  ;;  %v1535_v3 = vmax.f32 %v867_v58, 0.0 }
 0x128   : > { %v1538_v0 = vmax.f32 %v1222_v62, 0.0  ;;  %v871_v1 = vpop.f32.mrb[10].mxu0  ;;  %v1224_v2 = vpop.f32.mrb[10].mxu1  ;;  %v1536_v8 = vmax.f32 %v869_v61, 0.0 }
 0x129   : > { %v1539_v4 = vmax.f32 %v871_v1, 0.0  ;;  %v1541_v5 = vmax.f32 %v1224_v2, 0.0  ;;  %v873_v6 = vpop.f32.mrb[11].mxu0  ;;  %v1226_v7 = vpop.f32.mrb[11].mxu1 }
 0x12a   : > { %v1540_v9 = vmax.f32 %v873_v6, 0.0  ;;  %v1542_v10 = vmax.f32 %v1226_v7, 0.0 }
 0x12b   : > { %v2845_v11 = vpack.c.bf16 %v1539_v4, %v1535_v3  ;;  %v2847_v12 = vpack.c.bf16 %v1541_v5, %v1537_v60  ;;  %2252 = vmatmul.mubr.msk.bf16.gmra.mrb[116].mxu0 %vm700_vm2, %v2399_v63  ;;  %2284 = vmatmul.mubr.msk.bf16.gmra.mrb[116].mxu1 %vm700_vm2, %v2399_v63 }
 0x12c   : > { %v2851_v13 = vpack.c.bf16 %v1540_v9, %v1536_v8  ;;  %v2853_v14 = vpack.c.bf16 %v1542_v10, %v1538_v0  ;;  %1145 = vmatprep.mubr.bf16.mxu0 %v2499_v37  ;;  %1498 = vmatprep.mubr.bf16.mxu1 %v2499_v37 }
 0x12e   : > { %v877_v15 = vpop.f32.mrb[12].mxu0  ;;  %v1230_v16 = vpop.f32.mrb[12].mxu1 }
 0x12f   : > { %v1545_v17 = vmax.f32 %v1230_v16, 0.0  ;;  %v879_v18 = vpop.f32.mrb[13].mxu0  ;;  %v1232_v19 = vpop.f32.mrb[13].mxu1  ;;  %v1543_v24 = vmax.f32 %v877_v15, 0.0 }
 0x130   : > { %v1546_v21 = vmax.f32 %v1232_v19, 0.0  ;;  %v881_v22 = vpop.f32.mrb[14].mxu0  ;;  %v1234_v23 = vpop.f32.mrb[14].mxu1  ;;  %v1544_v29 = vmax.f32 %v879_v18, 0.0 }
 0x131   : > { %v1547_v25 = vmax.f32 %v881_v22, 0.0  ;;  %v1549_v26 = vmax.f32 %v1234_v23, 0.0  ;;  %v883_v27 = vpop.f32.mrb[15].mxu0  ;;  %v1236_v28 = vpop.f32.mrb[15].mxu1 }
 0x132   : > { %v1548_v30 = vmax.f32 %v883_v27, 0.0  ;;  %v1550_v31 = vmax.f32 %v1236_v28, 0.0 }
 0x133   : > { %v2858_v36 = vpack.c.bf16 %v1547_v25, %v1543_v24  ;;  %v2860_v38 = vpack.c.bf16 %v1549_v26, %v1545_v17  ;;  %2253 = vmatmul.mubr.msk.bf16.gmra.mrb[120].mxu0 %vm700_vm2, %v2400_v20  ;;  %2285 = vmatmul.mubr.msk.bf16.gmra.mrb[120].mxu1 %vm700_vm2, %v2400_v20 }
 0x134   : > { %v2864_v39 = vpack.c.bf16 %v1548_v30, %v1544_v29  ;;  %v2866_v40 = vpack.c.bf16 %v1550_v31, %v1546_v21  ;;  %1155 = vmatprep.mubr.bf16.mxu0 %v2499_v37  ;;  %1508 = vmatprep.mubr.bf16.mxu1 %v2499_v37 }
 0x136   : > { %v887_v41 = vpop.f32.mrb[16].mxu0  ;;  %v1240_v42 = vpop.f32.mrb[16].mxu1 }
 0x137   : > { %v1553_v43 = vmax.f32 %v1240_v42, 0.0  ;;  %v889_v44 = vpop.f32.mrb[17].mxu0  ;;  %v1242_v45 = vpop.f32.mrb[17].mxu1  ;;  %v1551_v50 = vmax.f32 %v887_v41, 0.0 }
 0x138   : > { %v1554_v47 = vmax.f32 %v1242_v45, 0.0  ;;  %v891_v48 = vpop.f32.mrb[18].mxu0  ;;  %v1244_v49 = vpop.f32.mrb[18].mxu1  ;;  %v1552_v59 = vmax.f32 %v889_v44, 0.0 }
 0x139   : > { %v1555_v51 = vmax.f32 %v891_v48, 0.0  ;;  %v1557_v52 = vmax.f32 %v1244_v49, 0.0  ;;  %v893_v53 = vpop.f32.mrb[19].mxu0  ;;  %v1246_v58 = vpop.f32.mrb[19].mxu1 }
 0x13a   : > { %v1556_v60 = vmax.f32 %v893_v53, 0.0  ;;  %v1558_v61 = vmax.f32 %v1246_v58, 0.0 }
 0x13b   : > { %v2871_v62 = vpack.c.bf16 %v1555_v51, %v1551_v50  ;;  %v2873_v37 = vpack.c.bf16 %v1557_v52, %v1553_v43  ;;  %2254 = vmatmul.mubr.msk.bf16.gmra.mrb[124].mxu0 %vm700_vm2, %v2401_v46  ;;  %2286 = vmatmul.mubr.msk.bf16.gmra.mrb[124].mxu1 %vm700_vm2, %v2401_v46 }
 0x13c   : > { %v2877_v63 = vpack.c.bf16 %v1556_v60, %v1552_v59  ;;  %v2879_v0 = vpack.c.bf16 %v1558_v61, %v1554_v47 }
 0x13d   : > { %v1903_v1 = vmax.bf16 %v2871_v62, %v2819_v32  ;;  %v1905_v2 = vmax.bf16 %v2873_v37, %v2821_v33 }
 0x13e   : > { %v1904_v3 = vmax.bf16 %v2877_v63, %v2825_v34  ;;  %v1906_v4 = vmax.bf16 %v2879_v0, %v2827_v35  ;;  %v897_v5 = vpop.f32.mrb[20].mxu0  ;;  %v1250_v6 = vpop.f32.mrb[20].mxu1 }
 0x13f   : > { %v1561_v7 = vmax.f32 %v1250_v6, 0.0  ;;  %v899_v8 = vpop.f32.mrb[21].mxu0  ;;  %v1252_v9 = vpop.f32.mrb[21].mxu1  ;;  %v1559_v17 = vmax.f32 %v897_v5, 0.0 }
 0x140   : > { %v1562_v10 = vmax.f32 %v1252_v9, 0.0  ;;  %v901_v15 = vpop.f32.mrb[22].mxu0  ;;  %v1254_v16 = vpop.f32.mrb[22].mxu1  ;;  %v1560_v22 = vmax.f32 %v899_v8, 0.0 }
 0x141   : > { %v1563_v18 = vmax.f32 %v901_v15, 0.0  ;;  %v1565_v19 = vmax.f32 %v1254_v16, 0.0  ;;  %v903_v20 = vpop.f32.mrb[23].mxu0  ;;  %v1256_v21 = vpop.f32.mrb[23].mxu1 }
 0x142   : > { %v1564_v23 = vmax.f32 %v903_v20, 0.0  ;;  %v1566_v24 = vmax.f32 %v1256_v21, 0.0 }
 0x143   : > { %v2889_v25 = vpack.c.bf16 %v1563_v18, %v1559_v17  ;;  %v2891_v26 = vpack.c.bf16 %v1565_v19, %v1561_v7 }
 0x144   : > { %v2893_v27 = vpack.c.bf16 %v1564_v23, %v1560_v22  ;;  %v2895_v28 = vpack.c.bf16 %v1566_v24, %v1562_v10 }
 0x145   : > { %v1907_v29 = vmax.bf16 %v2889_v25, %v2832_v54  ;;  %v1909_v30 = vmax.bf16 %v2891_v26, %v2834_v55 }
 0x146   : > { %v1908_v31 = vmax.bf16 %v2893_v27, %v2838_v56  ;;  %v1910_v41 = vmax.bf16 %v2895_v28, %v2840_v57  ;;  %v907_v42 = vpop.f32.mrb[24].mxu0  ;;  %v1260_v43 = vpop.f32.mrb[24].mxu1 }
 0x147   : > { %v1569_v44 = vmax.f32 %v1260_v43, 0.0  ;;  %v909_v45 = vpop.f32.mrb[25].mxu0  ;;  %v1262_v46 = vpop.f32.mrb[25].mxu1  ;;  %v1567_v50 = vmax.f32 %v907_v42, 0.0 }
 0x148   : > { %v1570_v47 = vmax.f32 %v1262_v46, 0.0  ;;  %v911_v48 = vpop.f32.mrb[26].mxu0  ;;  %v1264_v49 = vpop.f32.mrb[26].mxu1  ;;  %v1568_v59 = vmax.f32 %v909_v45, 0.0 }
 0x149   : > { %v1571_v51 = vmax.f32 %v911_v48, 0.0  ;;  %v1573_v52 = vmax.f32 %v1264_v49, 0.0  ;;  %v913_v53 = vpop.f32.mrb[27].mxu0  ;;  %v1266_v58 = vpop.f32.mrb[27].mxu1 }
 0x14a   : > { %v1572_v60 = vmax.f32 %v913_v53, 0.0  ;;  %v1574_v61 = vmax.f32 %v1266_v58, 0.0 }
 0x14b   : > { %v2905_v5 = vpack.c.bf16 %v1571_v51, %v1567_v50  ;;  %v2907_v6 = vpack.c.bf16 %v1573_v52, %v1569_v44 }
 0x14c   : > { %v2909_v7 = vpack.c.bf16 %v1572_v60, %v1568_v59  ;;  %v2911_v8 = vpack.c.bf16 %v1574_v61, %v1570_v47 }
 0x14d   : > { %v1911_v9 = vmax.bf16 %v2905_v5, %v2845_v11  ;;  %v1913_v10 = vmax.bf16 %v2907_v6, %v2847_v12 }
 0x14e   : > { %v1912_v15 = vmax.bf16 %v2909_v7, %v2851_v13  ;;  %v1914_v16 = vmax.bf16 %v2911_v8, %v2853_v14  ;;  %v917_v17 = vpop.f32.mrb[28].mxu0  ;;  %v1270_v18 = vpop.f32.mrb[28].mxu1 }
 0x14f   : > { %v1577_v19 = vmax.f32 %v1270_v18, 0.0  ;;  %v919_v20 = vpop.f32.mrb[29].mxu0  ;;  %v1272_v21 = vpop.f32.mrb[29].mxu1  ;;  %v1575_v42 = vmax.f32 %v917_v17, 0.0 }
 0x150   : > { %v1578_v22 = vmax.f32 %v1272_v21, 0.0  ;;  %v921_v23 = vpop.f32.mrb[30].mxu0  ;;  %v1274_v24 = vpop.f32.mrb[30].mxu1  ;;  %v1576_v47 = vmax.f32 %v919_v20, 0.0 }
 0x151   : > { %v1579_v43 = vmax.f32 %v921_v23, 0.0  ;;  %v1581_v44 = vmax.f32 %v1274_v24, 0.0  ;;  %v923_v45 = vpop.f32.mrb[31].mxu0  ;;  %v1276_v46 = vpop.f32.mrb[31].mxu1 }
 0x152   : > { %v1580_v48 = vmax.f32 %v923_v45, 0.0  ;;  %v1582_v49 = vmax.f32 %v1276_v46, 0.0 }
 0x153   : > { %v2921_v50 = vpack.c.bf16 %v1579_v43, %v1575_v42  ;;  %v2923_v51 = vpack.c.bf16 %v1581_v44, %v1577_v19 }
 0x154   : > { %v2925_v52 = vpack.c.bf16 %v1580_v48, %v1576_v47  ;;  %v2927_v53 = vpack.c.bf16 %v1582_v49, %v1578_v22 }
 0x156   : > { %v927_v17 = vpop.f32.mrb[32].mxu0  ;;  %v1280_v18 = vpop.f32.mrb[32].mxu1 }
 0x157   : > { %v1585_v19 = vmax.f32 %v1280_v18, 0.0  ;;  %v929_v20 = vpop.f32.mrb[33].mxu0  ;;  %v1282_v21 = vpop.f32.mrb[33].mxu1  ;;  %v1583_v42 = vmax.f32 %v927_v17, 0.0 }
 0x158   : > { %v1586_v23 = vmax.f32 %v1282_v21, 0.0  ;;  %v931_v22 = vpop.f32.mrb[34].mxu0  ;;  %v1284_v24 = vpop.f32.mrb[34].mxu1  ;;  %v1584_v47 = vmax.f32 %v929_v20, 0.0 }
 0x159   : > { %v1587_v43 = vmax.f32 %v931_v22, 0.0  ;;  %v1589_v44 = vmax.f32 %v1284_v24, 0.0  ;;  %v933_v45 = vpop.f32.mrb[35].mxu0  ;;  %v1286_v46 = vpop.f32.mrb[35].mxu1 }
 0x15a   : > { %v1588_v48 = vmax.f32 %v933_v45, 0.0  ;;  %v1590_v49 = vmax.f32 %v1286_v46, 0.0 }
 0x15b   : > { %v1807_v60 = vpack.c.bf16 %v1587_v43, %v1583_v42  ;;  %v1809_v59 = vpack.c.bf16 %v1589_v44, %v1585_v19 }
 0x15c   : > { %v1808_v58 = vpack.c.bf16 %v1588_v48, %v1584_v47  ;;  %v1810_v61 = vpack.c.bf16 %v1590_v49, %v1586_v23 }
 0x15d   : > { %v2940_v18 = vmax.bf16 %v1903_v1, %v1807_v60  ;;  %v2945_v17 = vmax.bf16 %v1905_v2, %v1809_v59 }
 0x15e   : > { %v2950_v20 = vmax.bf16 %v1904_v3, %v1808_v58  ;;  %v2955_v19 = vmax.bf16 %v1906_v4, %v1810_v61  ;;  %v937_v21 = vpop.f32.mrb[36].mxu0  ;;  %v1290_v23 = vpop.f32.mrb[36].mxu1 }
 0x15f   : > { %v1593_v32 = vmax.f32 %v1290_v23, 0.0  ;;  %v939_v62 = vpop.f32.mrb[37].mxu0  ;;  %v1292_v1 = vpop.f32.mrb[37].mxu1  ;;  %v1591_v37 = vmax.f32 %v937_v21, 0.0 }
 0x160   : > { %v1594_v60 = vmax.f32 %v1292_v1, 0.0  ;;  %v941_v22 = vpop.f32.mrb[38].mxu0  ;;  %v1294_v33 = vpop.f32.mrb[38].mxu1  ;;  %v1592_v63 = vmax.f32 %v939_v62, 0.0 }
 0x161   : > { %v1595_v2 = vmax.f32 %v941_v22, 0.0  ;;  %v1597_v59 = vmax.f32 %v1294_v33, 0.0  ;;  %v943_v24 = vpop.f32.mrb[39].mxu0  ;;  %v1296_v34 = vpop.f32.mrb[39].mxu1 }
 0x162   : > { %v1596_v3 = vmax.f32 %v943_v24, 0.0  ;;  %v1598_v58 = vmax.f32 %v1296_v34, 0.0 }
 0x163   : > { %v1811_v42 = vpack.c.bf16 %v1595_v2, %v1591_v37  ;;  %v1813_v35 = vpack.c.bf16 %v1597_v59, %v1593_v32 }
 0x164   : > { %v1812_v0 = vpack.c.bf16 %v1596_v3, %v1592_v63  ;;  %v1814_v4 = vpack.c.bf16 %v1598_v58, %v1594_v60 }
 0x165   : > { %v2960_v61 = vmax.bf16 %v1907_v29, %v1811_v42  ;;  %v2965_v43 = vmax.bf16 %v1909_v30, %v1813_v35  ;;  %v3400_v42 = vmax.bf16 %v2921_v50, %v2858_v36 }
 0x166   : > { %v2970_v44 = vmax.bf16 %v1908_v31, %v1812_v0  ;;  %v2975_v45 = vmax.bf16 %v1910_v41, %v1814_v4  ;;  %v947_v46 = vpop.f32.mrb[40].mxu0  ;;  %v1300_v47 = vpop.f32.mrb[40].mxu1  ;;  %v3401_v0 = vmax.bf16 %v2923_v51, %v2860_v38 }
 0x167   : > { %v1601_v54 = vmax.f32 %v1300_v47, 0.0  ;;  %v949_v25 = vpop.f32.mrb[41].mxu0  ;;  %v1302_v29 = vpop.f32.mrb[41].mxu1  ;;  %v1599_v26 = vmax.f32 %v947_v46, 0.0  ;;  %v3402_v46 = vmax.bf16 %v2925_v52, %v2864_v39 }
 0x168   : > { %v1602_v48 = vmax.f32 %v1302_v29, 0.0  ;;  %v951_v49 = vpop.f32.mrb[42].mxu0  ;;  %v1304_v55 = vpop.f32.mrb[42].mxu1  ;;  %v1600_v27 = vmax.f32 %v949_v25, 0.0 }
 0x169   : > { %v1603_v30 = vmax.f32 %v951_v49, 0.0  ;;  %v1605_v21 = vmax.f32 %v1304_v55, 0.0  ;;  %v953_v23 = vpop.f32.mrb[43].mxu0  ;;  %v1306_v56 = vpop.f32.mrb[43].mxu1 }
 0x16a   : > { %v1604_v31 = vmax.f32 %v953_v23, 0.0  ;;  %v1606_v32 = vmax.f32 %v1306_v56, 0.0 }
 0x16b   : > { %v1815_v62 = vpack.c.bf16 %v1603_v30, %v1599_v26  ;;  %v1817_v57 = vpack.c.bf16 %v1605_v21, %v1601_v54  ;;  %v3403_v54 = vmax.bf16 %v2927_v53, %v2866_v40 }
 0x16c   : > { %v1816_v28 = vpack.c.bf16 %v1604_v31, %v1600_v27  ;;  %v1818_v41 = vpack.c.bf16 %v1606_v32, %v1602_v48 }
 0x16d   : > { %v2980_v1 = vmax.bf16 %v1911_v9, %v1815_v62  ;;  %v2985_v60 = vmax.bf16 %v1913_v10, %v1817_v57 }
 0x16e   : > { %v2990_v22 = vmax.bf16 %v1912_v15, %v1816_v28  ;;  %v2995_v33 = vmax.bf16 %v1914_v16, %v1818_v41  ;;  %v957_v37 = vpop.f32.mrb[44].mxu0  ;;  %v1310_v2 = vpop.f32.mrb[44].mxu1 }
 0x16f   : > { %v1609_v11 = vmax.f32 %v1310_v2, 0.0  ;;  %v959_v5 = vpop.f32.mrb[45].mxu0  ;;  %v1312_v9 = vpop.f32.mrb[45].mxu1  ;;  %v1607_v6 = vmax.f32 %v957_v37, 0.0 }
 0x170   : > { %v1610_v59 = vmax.f32 %v1312_v9, 0.0  ;;  %v961_v24 = vpop.f32.mrb[46].mxu0  ;;  %v1314_v12 = vpop.f32.mrb[46].mxu1  ;;  %v1608_v7 = vmax.f32 %v959_v5, 0.0 }
 0x171   : > { %v1611_v10 = vmax.f32 %v961_v24, 0.0  ;;  %v1613_v34 = vmax.f32 %v1314_v12, 0.0  ;;  %v963_v63 = vpop.f32.mrb[47].mxu0  ;;  %v1316_v13 = vpop.f32.mrb[47].mxu1 }
 0x172   : > { %v1612_v15 = vmax.f32 %v963_v63, 0.0  ;;  %v1614_v3 = vmax.f32 %v1316_v13, 0.0 }
 0x173   : > { %v1819_v58 = vpack.c.bf16 %v1611_v10, %v1607_v6  ;;  %v1821_v14 = vpack.c.bf16 %v1613_v34, %v1609_v11 }
 0x174   : > { %v1820_v8 = vpack.c.bf16 %v1612_v15, %v1608_v7  ;;  %v1822_v16 = vpack.c.bf16 %v1614_v3, %v1610_v59 }
 0x175   : > { %v3000_v35 = vmax.bf16 %v3400_v42, %v1819_v58  ;;  %v3005_v4 = vmax.bf16 %v3401_v0, %v1821_v14 }
 0x176   : > { %v3010_v47 = vmax.bf16 %v3402_v46, %v1820_v8  ;;  %v3015_v25 = vmax.bf16 %v3403_v54, %v1822_v16  ;;  %v967_v29 = vpop.f32.mrb[48].mxu0  ;;  %v1320_v48 = vpop.f32.mrb[48].mxu1 }
 0x177   : > { %v1617_v36 = vmax.f32 %v1320_v48, 0.0  ;;  %v969_v50 = vpop.f32.mrb[49].mxu0  ;;  %v1322_v49 = vpop.f32.mrb[49].mxu1  ;;  %v1615_v51 = vmax.f32 %v967_v29, 0.0 }
 0x178   : > { %v1618_v55 = vmax.f32 %v1322_v49, 0.0  ;;  %v971_v26 = vpop.f32.mrb[50].mxu0  ;;  %v1324_v38 = vpop.f32.mrb[50].mxu1  ;;  %v1616_v52 = vmax.f32 %v969_v50, 0.0 }
 0x179   : > { %v1619_v30 = vmax.f32 %v971_v26, 0.0  ;;  %v1621_v21 = vmax.f32 %v1324_v38, 0.0  ;;  %v973_v23 = vpop.f32.mrb[51].mxu0  ;;  %v1326_v39 = vpop.f32.mrb[51].mxu1 }
 0x17a   : > { %v1620_v56 = vmax.f32 %v973_v23, 0.0  ;;  %v1622_v27 = vmax.f32 %v1326_v39, 0.0 }
 0x17b   : > { %v3017_v31 = vpack.c.bf16 %v1619_v30, %v1615_v51  ;;  %v3019_v40 = vpack.c.bf16 %v1621_v21, %v1617_v36 }
 0x17c   : > { %v3021_v53 = vpack.c.bf16 %v1620_v56, %v1616_v52  ;;  %v3023_v32 = vpack.c.bf16 %v1622_v27, %v1618_v55 }
 0x17d   : > { %v1935_v62 = vmax.bf16 %v2940_v18, %v3017_v31  ;;  %v1937_v57 = vmax.bf16 %v2945_v17, %v3019_v40 }
 0x17e   : > { %v1936_v28 = vmax.bf16 %v2950_v20, %v3021_v53  ;;  %v1938_v41 = vmax.bf16 %v2955_v19, %v3023_v32  ;;  %v977_v37 = vpop.f32.mrb[52].mxu0  ;;  %v1330_v2 = vpop.f32.mrb[52].mxu1 }
 0x17f   : > { %v1625_v11 = vmax.f32 %v1330_v2, 0.0  ;;  %v979_v5 = vpop.f32.mrb[53].mxu0  ;;  %v1332_v9 = vpop.f32.mrb[53].mxu1  ;;  %v1623_v6 = vmax.f32 %v977_v37, 0.0 }
 0x180   : > { %v1626_v59 = vmax.f32 %v1332_v9, 0.0  ;;  %v981_v24 = vpop.f32.mrb[54].mxu0  ;;  %v1334_v12 = vpop.f32.mrb[54].mxu1  ;;  %v1624_v7 = vmax.f32 %v979_v5, 0.0 }
 0x181   : > { %v1627_v10 = vmax.f32 %v981_v24, 0.0  ;;  %v1629_v34 = vmax.f32 %v1334_v12, 0.0  ;;  %v983_v63 = vpop.f32.mrb[55].mxu0  ;;  %v1336_v13 = vpop.f32.mrb[55].mxu1 }
 0x182   : > { %v1628_v15 = vmax.f32 %v983_v63, 0.0  ;;  %v1630_v3 = vmax.f32 %v1336_v13, 0.0 }
 0x183   : > { %v3033_v58 = vpack.c.bf16 %v1627_v10, %v1623_v6  ;;  %v3035_v14 = vpack.c.bf16 %v1629_v34, %v1625_v11 }
 0x184   : > { %v3037_v8 = vpack.c.bf16 %v1628_v15, %v1624_v7  ;;  %v3039_v16 = vpack.c.bf16 %v1630_v3, %v1626_v59 }
 0x185   : > { %v1939_v42 = vmax.bf16 %v2960_v61, %v3033_v58  ;;  %v1941_v0 = vmax.bf16 %v2965_v43, %v3035_v14 }
 0x186   : > { %v1940_v46 = vmax.bf16 %v2970_v44, %v3037_v8  ;;  %v1942_v54 = vmax.bf16 %v2975_v45, %v3039_v16  ;;  %v987_v29 = vpop.f32.mrb[56].mxu0  ;;  %v1340_v48 = vpop.f32.mrb[56].mxu1 }
 0x187   : > { %v1633_v36 = vmax.f32 %v1340_v48, 0.0  ;;  %v989_v50 = vpop.f32.mrb[57].mxu0  ;;  %v1342_v49 = vpop.f32.mrb[57].mxu1  ;;  %v1631_v51 = vmax.f32 %v987_v29, 0.0 }
 0x188   : > { %v1634_v55 = vmax.f32 %v1342_v49, 0.0  ;;  %v991_v26 = vpop.f32.mrb[58].mxu0  ;;  %v1344_v38 = vpop.f32.mrb[58].mxu1  ;;  %v1632_v52 = vmax.f32 %v989_v50, 0.0 }
 0x189   : > { %v1635_v30 = vmax.f32 %v991_v26, 0.0  ;;  %v1637_v21 = vmax.f32 %v1344_v38, 0.0  ;;  %v993_v23 = vpop.f32.mrb[59].mxu0  ;;  %v1346_v39 = vpop.f32.mrb[59].mxu1 }
 0x18a   : > { %v1636_v56 = vmax.f32 %v993_v23, 0.0  ;;  %v1638_v27 = vmax.f32 %v1346_v39, 0.0 }
 0x18b   : > { %v3049_v37 = vpack.c.bf16 %v1635_v30, %v1631_v51  ;;  %v3051_v2 = vpack.c.bf16 %v1637_v21, %v1633_v36 }
 0x18c   : > { %v3053_v11 = vpack.c.bf16 %v1636_v56, %v1632_v52  ;;  %v3055_v5 = vpack.c.bf16 %v1638_v27, %v1634_v55 }
 0x18d   : > { %v1943_v9 = vmax.bf16 %v2980_v1, %v3049_v37  ;;  %v1945_v59 = vmax.bf16 %v2985_v60, %v3051_v2 }
 0x18e   : > { %v1944_v24 = vmax.bf16 %v2990_v22, %v3053_v11  ;;  %v1946_v12 = vmax.bf16 %v2995_v33, %v3055_v5  ;;  %v997_v6 = vpop.f32.mrb[60].mxu0  ;;  %v1350_v10 = vpop.f32.mrb[60].mxu1 }
 0x18f   : > { %v1641_v34 = vmax.f32 %v1350_v10, 0.0  ;;  %v999_v63 = vpop.f32.mrb[61].mxu0  ;;  %v1352_v13 = vpop.f32.mrb[61].mxu1  ;;  %v1639_v29 = vmax.f32 %v997_v6, 0.0 }
 0x190   : > { %v1642_v7 = vmax.f32 %v1352_v13, 0.0  ;;  %v1001_v15 = vpop.f32.mrb[62].mxu0  ;;  %v1354_v3 = vpop.f32.mrb[62].mxu1  ;;  %v1640_v55 = vmax.f32 %v999_v63, 0.0 }
 0x191   : > { %v1643_v48 = vmax.f32 %v1001_v15, 0.0  ;;  %v1645_v36 = vmax.f32 %v1354_v3, 0.0  ;;  %v1003_v50 = vpop.f32.mrb[63].mxu0  ;;  %v1356_v49 = vpop.f32.mrb[63].mxu1 }
 0x192   : > { %v1644_v26 = vmax.f32 %v1003_v50, 0.0  ;;  %v1646_v38 = vmax.f32 %v1356_v49, 0.0 }
 0x193   : > { %v3065_v51 = vpack.c.bf16 %v1643_v48, %v1639_v29  ;;  %v3067_v30 = vpack.c.bf16 %v1645_v36, %v1641_v34 }
 0x194   : > { %v3069_v21 = vpack.c.bf16 %v1644_v26, %v1640_v55  ;;  %v3071_v23 = vpack.c.bf16 %v1646_v38, %v1642_v7 }
 0x196   : > { %v1007_v6 = vpop.f32.mrb[64].mxu0  ;;  %v1360_v10 = vpop.f32.mrb[64].mxu1 }
 0x197   : > { %v1649_v34 = vmax.f32 %v1360_v10, 0.0  ;;  %v1009_v63 = vpop.f32.mrb[65].mxu0  ;;  %v1362_v13 = vpop.f32.mrb[65].mxu1  ;;  %v1647_v29 = vmax.f32 %v1007_v6, 0.0 }
 0x198   : > { %v1650_v15 = vmax.f32 %v1362_v13, 0.0  ;;  %v1011_v7 = vpop.f32.mrb[66].mxu0  ;;  %v1364_v3 = vpop.f32.mrb[66].mxu1  ;;  %v1648_v55 = vmax.f32 %v1009_v63, 0.0 }
 0x199   : > { %v1651_v48 = vmax.f32 %v1011_v7, 0.0  ;;  %v1653_v36 = vmax.f32 %v1364_v3, 0.0  ;;  %v1013_v50 = vpop.f32.mrb[67].mxu0  ;;  %v1366_v49 = vpop.f32.mrb[67].mxu1 }
 0x19a   : > { %v1652_v26 = vmax.f32 %v1013_v50, 0.0  ;;  %v1654_v38 = vmax.f32 %v1366_v49, 0.0 }
 0x19b   : > { %v1839_v56 = vpack.c.bf16 %v1651_v48, %v1647_v29  ;;  %v1841_v52 = vpack.c.bf16 %v1653_v36, %v1649_v34 }
 0x19c   : > { %v1840_v39 = vpack.c.bf16 %v1652_v26, %v1648_v55  ;;  %v1842_v27 = vpack.c.bf16 %v1654_v38, %v1650_v15 }
 0x19d   : > { %v3084_v10 = vmax.bf16 %v1935_v62, %v1839_v56  ;;  %v3089_v6 = vmax.bf16 %v1937_v57, %v1841_v52 }
 0x19e   : > { %v3094_v63 = vmax.bf16 %v1936_v28, %v1840_v39  ;;  %v3099_v34 = vmax.bf16 %v1938_v41, %v1842_v27  ;;  %v1017_v13 = vpop.f32.mrb[68].mxu0  ;;  %v1370_v15 = vpop.f32.mrb[68].mxu1 }
 0x19f   : > { %v1657_v18 = vmax.f32 %v1370_v15, 0.0  ;;  %v1019_v31 = vpop.f32.mrb[69].mxu0  ;;  %v1372_v62 = vpop.f32.mrb[69].mxu1  ;;  %v1655_v40 = vmax.f32 %v1017_v13, 0.0 }
 0x1a0   : > { %v1658_v56 = vmax.f32 %v1372_v62, 0.0  ;;  %v1021_v7 = vpop.f32.mrb[70].mxu0  ;;  %v1374_v17 = vpop.f32.mrb[70].mxu1  ;;  %v1656_v53 = vmax.f32 %v1019_v31, 0.0 }
 0x1a1   : > { %v1659_v57 = vmax.f32 %v1021_v7, 0.0  ;;  %v1661_v52 = vmax.f32 %v1374_v17, 0.0  ;;  %v1023_v3 = vpop.f32.mrb[71].mxu0  ;;  %v1376_v20 = vpop.f32.mrb[71].mxu1 }
 0x1a2   : > { %v1660_v28 = vmax.f32 %v1023_v3, 0.0  ;;  %v1662_v39 = vmax.f32 %v1376_v20, 0.0 }
 0x1a3   : > { %v1843_v29 = vpack.c.bf16 %v1659_v57, %v1655_v40  ;;  %v1845_v19 = vpack.c.bf16 %v1661_v52, %v1657_v18 }
 0x1a4   : > { %v1844_v32 = vpack.c.bf16 %v1660_v28, %v1656_v53  ;;  %v1846_v41 = vpack.c.bf16 %v1662_v39, %v1658_v56 }
 0x1a5   : > { %v3104_v27 = vmax.bf16 %v1939_v42, %v1843_v29  ;;  %v3109_v48 = vmax.bf16 %v1941_v0, %v1845_v19  ;;  %v3404_v29 = vmax.bf16 %v3000_v35, %v3065_v51 }
 0x1a6   : > { %v3114_v36 = vmax.bf16 %v1940_v46, %v1844_v32  ;;  %v3119_v50 = vmax.bf16 %v1942_v54, %v1846_v41  ;;  %v1027_v49 = vpop.f32.mrb[72].mxu0  ;;  %v1380_v55 = vpop.f32.mrb[72].mxu1  ;;  %v3405_v32 = vmax.bf16 %v3005_v4, %v3067_v30 }
 0x1a7   : > { %v1665_v61 = vmax.f32 %v1380_v55, 0.0  ;;  %v1029_v58 = vpop.f32.mrb[73].mxu0  ;;  %v1382_v42 = vpop.f32.mrb[73].mxu1  ;;  %v1663_v14 = vmax.f32 %v1027_v49, 0.0  ;;  %v3406_v49 = vmax.bf16 %v3010_v47, %v3069_v21 }
 0x1a8   : > { %v1666_v26 = vmax.f32 %v1382_v42, 0.0  ;;  %v1031_v38 = vpop.f32.mrb[74].mxu0  ;;  %v1384_v43 = vpop.f32.mrb[74].mxu1  ;;  %v1664_v8 = vmax.f32 %v1029_v58, 0.0 }
 0x1a9   : > { %v1667_v0 = vmax.f32 %v1031_v38, 0.0  ;;  %v1669_v13 = vmax.f32 %v1384_v43, 0.0  ;;  %v1033_v15 = vpop.f32.mrb[75].mxu0  ;;  %v1386_v44 = vpop.f32.mrb[75].mxu1 }
 0x1aa   : > { %v1668_v46 = vmax.f32 %v1033_v15, 0.0  ;;  %v1670_v18 = vmax.f32 %v1386_v44, 0.0 }
 0x1ab   : > { %v1847_v31 = vpack.c.bf16 %v1667_v0, %v1663_v14  ;;  %v1849_v45 = vpack.c.bf16 %v1669_v13, %v1665_v61  ;;  %v3407_v61 = vmax.bf16 %v3015_v25, %v3071_v23 }
 0x1ac   : > { %v1848_v16 = vpack.c.bf16 %v1668_v46, %v1664_v8  ;;  %v1850_v54 = vpack.c.bf16 %v1670_v18, %v1666_v26 }
 0x1ad   : > { %v3124_v62 = vmax.bf16 %v1943_v9, %v1847_v31  ;;  %v3129_v56 = vmax.bf16 %v1945_v59, %v1849_v45 }
 0x1ae   : > { %v3134_v7 = vmax.bf16 %v1944_v24, %v1848_v16  ;;  %v3139_v17 = vmax.bf16 %v1946_v12, %v1850_v54  ;;  %v1037_v40 = vpop.f32.mrb[76].mxu0  ;;  %v1390_v57 = vpop.f32.mrb[76].mxu1 }
 0x1af   : > { %v1673_v1 = vmax.f32 %v1390_v57, 0.0  ;;  %v1039_v37 = vpop.f32.mrb[77].mxu0  ;;  %v1392_v9 = vpop.f32.mrb[77].mxu1  ;;  %v1671_v2 = vmax.f32 %v1037_v40, 0.0 }
 0x1b0   : > { %v1674_v52 = vmax.f32 %v1392_v9, 0.0  ;;  %v1041_v3 = vpop.f32.mrb[78].mxu0  ;;  %v1394_v60 = vpop.f32.mrb[78].mxu1  ;;  %v1672_v11 = vmax.f32 %v1039_v37, 0.0 }
 0x1b1   : > { %v1675_v59 = vmax.f32 %v1041_v3, 0.0  ;;  %v1677_v20 = vmax.f32 %v1394_v60, 0.0  ;;  %v1043_v53 = vpop.f32.mrb[79].mxu0  ;;  %v1396_v22 = vpop.f32.mrb[79].mxu1 }
 0x1b2   : > { %v1676_v24 = vmax.f32 %v1043_v53, 0.0  ;;  %v1678_v28 = vmax.f32 %v1396_v22, 0.0 }
 0x1b3   : > { %v1851_v39 = vpack.c.bf16 %v1675_v59, %v1671_v2  ;;  %v1853_v33 = vpack.c.bf16 %v1677_v20, %v1673_v1 }
 0x1b4   : > { %v1852_v5 = vpack.c.bf16 %v1676_v24, %v1672_v11  ;;  %v1854_v12 = vpack.c.bf16 %v1678_v28, %v1674_v52 }
 0x1b5   : > { %v3144_v19 = vmax.bf16 %v3404_v29, %v1851_v39  ;;  %v3149_v41 = vmax.bf16 %v3405_v32, %v1853_v33 }
 0x1b6   : > { %v3154_v55 = vmax.bf16 %v3406_v49, %v1852_v5  ;;  %v3159_v58 = vmax.bf16 %v3407_v61, %v1854_v12  ;;  %v1047_v42 = vpop.f32.mrb[80].mxu0  ;;  %v1400_v26 = vpop.f32.mrb[80].mxu1 }
 0x1b7   : > { %v1681_v35 = vmax.f32 %v1400_v26, 0.0  ;;  %v1049_v51 = vpop.f32.mrb[81].mxu0  ;;  %v1402_v38 = vpop.f32.mrb[81].mxu1  ;;  %v1679_v30 = vmax.f32 %v1047_v42, 0.0 }
 0x1b8   : > { %v1682_v43 = vmax.f32 %v1402_v38, 0.0  ;;  %v1051_v14 = vpop.f32.mrb[82].mxu0  ;;  %v1404_v4 = vpop.f32.mrb[82].mxu1  ;;  %v1680_v21 = vmax.f32 %v1049_v51, 0.0 }
 0x1b9   : > { %v1683_v0 = vmax.f32 %v1051_v14, 0.0  ;;  %v1685_v13 = vmax.f32 %v1404_v4, 0.0  ;;  %v1053_v15 = vpop.f32.mrb[83].mxu0  ;;  %v1406_v47 = vpop.f32.mrb[83].mxu1 }
 0x1ba   : > { %v1684_v44 = vmax.f32 %v1053_v15, 0.0  ;;  %v1686_v8 = vmax.f32 %v1406_v47, 0.0 }
 0x1bb   : > { %v3161_v46 = vpack.c.bf16 %v1683_v0, %v1679_v30  ;;  %v3163_v25 = vpack.c.bf16 %v1685_v13, %v1681_v35 }
 0x1bc   : > { %v3165_v23 = vpack.c.bf16 %v1684_v44, %v1680_v21  ;;  %v3167_v18 = vpack.c.bf16 %v1686_v8, %v1682_v43 }
 0x1bd   : > { %v1967_v31 = vmax.bf16 %v3084_v10, %v3161_v46  ;;  %v1969_v45 = vmax.bf16 %v3089_v6, %v3163_v25 }
 0x1be   : > { %v1968_v16 = vmax.bf16 %v3094_v63, %v3165_v23  ;;  %v1970_v54 = vmax.bf16 %v3099_v34, %v3167_v18  ;;  %v1057_v40 = vpop.f32.mrb[84].mxu0  ;;  %v1410_v57 = vpop.f32.mrb[84].mxu1 }
 0x1bf   : > { %v1689_v1 = vmax.f32 %v1410_v57, 0.0  ;;  %v1059_v37 = vpop.f32.mrb[85].mxu0  ;;  %v1412_v9 = vpop.f32.mrb[85].mxu1  ;;  %v1687_v2 = vmax.f32 %v1057_v40, 0.0 }
 0x1c0   : > { %v1690_v52 = vmax.f32 %v1412_v9, 0.0  ;;  %v1061_v3 = vpop.f32.mrb[86].mxu0  ;;  %v1414_v60 = vpop.f32.mrb[86].mxu1  ;;  %v1688_v11 = vmax.f32 %v1059_v37, 0.0 }
 0x1c1   : > { %v1691_v59 = vmax.f32 %v1061_v3, 0.0  ;;  %v1693_v20 = vmax.f32 %v1414_v60, 0.0  ;;  %v1063_v53 = vpop.f32.mrb[87].mxu0  ;;  %v1416_v22 = vpop.f32.mrb[87].mxu1 }
 0x1c2   : > { %v1692_v24 = vmax.f32 %v1063_v53, 0.0  ;;  %v1694_v28 = vmax.f32 %v1416_v22, 0.0 }
 0x1c3   : > { %v3177_v39 = vpack.c.bf16 %v1691_v59, %v1687_v2  ;;  %v3179_v33 = vpack.c.bf16 %v1693_v20, %v1689_v1 }
 0x1c4   : > { %v3181_v5 = vpack.c.bf16 %v1692_v24, %v1688_v11  ;;  %v3183_v12 = vpack.c.bf16 %v1694_v28, %v1690_v52 }
 0x1c5   : > { %v1971_v29 = vmax.bf16 %v3104_v27, %v3177_v39  ;;  %v1973_v32 = vmax.bf16 %v3109_v48, %v3179_v33 }
 0x1c6   : > { %v1972_v49 = vmax.bf16 %v3114_v36, %v3181_v5  ;;  %v1974_v61 = vmax.bf16 %v3119_v50, %v3183_v12  ;;  %v1067_v42 = vpop.f32.mrb[88].mxu0  ;;  %v1420_v26 = vpop.f32.mrb[88].mxu1 }
 0x1c7   : > { %v1697_v35 = vmax.f32 %v1420_v26, 0.0  ;;  %v1069_v51 = vpop.f32.mrb[89].mxu0  ;;  %v1422_v38 = vpop.f32.mrb[89].mxu1  ;;  %v1695_v30 = vmax.f32 %v1067_v42, 0.0 }
 0x1c8   : > { %v1698_v43 = vmax.f32 %v1422_v38, 0.0  ;;  %v1071_v14 = vpop.f32.mrb[90].mxu0  ;;  %v1424_v4 = vpop.f32.mrb[90].mxu1  ;;  %v1696_v21 = vmax.f32 %v1069_v51, 0.0 }
 0x1c9   : > { %v1699_v0 = vmax.f32 %v1071_v14, 0.0  ;;  %v1701_v13 = vmax.f32 %v1424_v4, 0.0  ;;  %v1073_v15 = vpop.f32.mrb[91].mxu0  ;;  %v1426_v47 = vpop.f32.mrb[91].mxu1 }
 0x1ca   : > { %v1700_v44 = vmax.f32 %v1073_v15, 0.0  ;;  %v1702_v8 = vmax.f32 %v1426_v47, 0.0 }
 0x1cb   : > { %v3193_v40 = vpack.c.bf16 %v1699_v0, %v1695_v30  ;;  %v3195_v57 = vpack.c.bf16 %v1701_v13, %v1697_v35 }
 0x1cc   : > { %v3197_v1 = vpack.c.bf16 %v1700_v44, %v1696_v21  ;;  %v3199_v37 = vpack.c.bf16 %v1702_v8, %v1698_v43 }
 0x1cd   : > { %v1975_v9 = vmax.bf16 %v3124_v62, %v3193_v40  ;;  %v1977_v52 = vmax.bf16 %v3129_v56, %v3195_v57 }
 0x1ce   : > { %v1976_v3 = vmax.bf16 %v3134_v7, %v3197_v1  ;;  %v1978_v60 = vmax.bf16 %v3139_v17, %v3199_v37  ;;  %v1077_v2 = vpop.f32.mrb[92].mxu0  ;;  %v1430_v59 = vpop.f32.mrb[92].mxu1 }
 0x1cf   : > { %v1705_v20 = vmax.f32 %v1430_v59, 0.0  ;;  %v1079_v53 = vpop.f32.mrb[93].mxu0  ;;  %v1432_v22 = vpop.f32.mrb[93].mxu1  ;;  %v1703_v42 = vmax.f32 %v1077_v2, 0.0 }
 0x1d0   : > { %v1706_v11 = vmax.f32 %v1432_v22, 0.0  ;;  %v1081_v24 = vpop.f32.mrb[94].mxu0  ;;  %v1434_v28 = vpop.f32.mrb[94].mxu1  ;;  %v1704_v43 = vmax.f32 %v1079_v53, 0.0 }
 0x1d1   : > { %v1707_v26 = vmax.f32 %v1081_v24, 0.0  ;;  %v1709_v35 = vmax.f32 %v1434_v28, 0.0  ;;  %v1083_v51 = vpop.f32.mrb[95].mxu0  ;;  %v1436_v38 = vpop.f32.mrb[95].mxu1 }
 0x1d2   : > { %v1708_v14 = vmax.f32 %v1083_v51, 0.0  ;;  %v1710_v4 = vmax.f32 %v1436_v38, 0.0 }
 0x1d3   : > { %v3209_v30 = vpack.c.bf16 %v1707_v26, %v1703_v42  ;;  %v3211_v0 = vpack.c.bf16 %v1709_v35, %v1705_v20 }
 0x1d4   : > { %v3213_v13 = vpack.c.bf16 %v1708_v14, %v1704_v43  ;;  %v3215_v15 = vpack.c.bf16 %v1710_v4, %v1706_v11 }
 0x1d6   : > { %v1087_v2 = vpop.f32.mrb[96].mxu0  ;;  %v1440_v59 = vpop.f32.mrb[96].mxu1 }
 0x1d7   : > { %v1713_v20 = vmax.f32 %v1440_v59, 0.0  ;;  %v1089_v53 = vpop.f32.mrb[97].mxu0  ;;  %v1442_v22 = vpop.f32.mrb[97].mxu1  ;;  %v1711_v42 = vmax.f32 %v1087_v2, 0.0 }
 0x1d8   : > { %v1714_v24 = vmax.f32 %v1442_v22, 0.0  ;;  %v1091_v11 = vpop.f32.mrb[98].mxu0  ;;  %v1444_v28 = vpop.f32.mrb[98].mxu1  ;;  %v1712_v43 = vmax.f32 %v1089_v53, 0.0 }
 0x1d9   : > { %v1715_v26 = vmax.f32 %v1091_v11, 0.0  ;;  %v1717_v35 = vmax.f32 %v1444_v28, 0.0  ;;  %v1093_v51 = vpop.f32.mrb[99].mxu0  ;;  %v1446_v38 = vpop.f32.mrb[99].mxu1 }
 0x1da   : > { %v1716_v14 = vmax.f32 %v1093_v51, 0.0  ;;  %v1718_v4 = vmax.f32 %v1446_v38, 0.0 }
 0x1db   : > { %v1871_v44 = vpack.c.bf16 %v1715_v26, %v1711_v42  ;;  %v1873_v21 = vpack.c.bf16 %v1717_v35, %v1713_v20 }
 0x1dc   : > { %v1872_v47 = vpack.c.bf16 %v1716_v14, %v1712_v43  ;;  %v1874_v8 = vpack.c.bf16 %v1718_v4, %v1714_v24 }
 0x1dd   : > { %v3228_v59 = vmax.bf16 %v1967_v31, %v1871_v44  ;;  %v3233_v2 = vmax.bf16 %v1969_v45, %v1873_v21 }
 0x1de   : > { %v3238_v53 = vmax.bf16 %v1968_v16, %v1872_v47  ;;  %v3243_v20 = vmax.bf16 %v1970_v54, %v1874_v8  ;;  %v1097_v22 = vpop.f32.mrb[100].mxu0  ;;  %v1450_v24 = vpop.f32.mrb[100].mxu1 }
 0x1df   : > { %v1721_v10 = vmax.f32 %v1450_v24, 0.0  ;;  %v1099_v46 = vpop.f32.mrb[101].mxu0  ;;  %v1452_v31 = vpop.f32.mrb[101].mxu1  ;;  %v1719_v25 = vmax.f32 %v1097_v22, 0.0 }
 0x1e0   : > { %v1722_v44 = vmax.f32 %v1452_v31, 0.0  ;;  %v1101_v11 = vpop.f32.mrb[102].mxu0  ;;  %v1454_v6 = vpop.f32.mrb[102].mxu1  ;;  %v1720_v23 = vmax.f32 %v1099_v46, 0.0 }
 0x1e1   : > { %v1723_v45 = vmax.f32 %v1101_v11, 0.0  ;;  %v1725_v21 = vmax.f32 %v1454_v6, 0.0  ;;  %v1103_v28 = vpop.f32.mrb[103].mxu0  ;;  %v1456_v63 = vpop.f32.mrb[103].mxu1 }
 0x1e2   : > { %v1724_v16 = vmax.f32 %v1103_v28, 0.0  ;;  %v1726_v47 = vmax.f32 %v1456_v63, 0.0 }
 0x1e3   : > { %v1875_v42 = vpack.c.bf16 %v1723_v45, %v1719_v25  ;;  %v1877_v34 = vpack.c.bf16 %v1725_v21, %v1721_v10 }
 0x1e4   : > { %v1876_v18 = vpack.c.bf16 %v1724_v16, %v1720_v23  ;;  %v1878_v54 = vpack.c.bf16 %v1726_v47, %v1722_v44 }
 0x1e5   : > { %v3248_v8 = vmax.bf16 %v1971_v29, %v1875_v42  ;;  %v3253_v26 = vmax.bf16 %v1973_v32, %v1877_v34  ;;  %v3408_v42 = vmax.bf16 %v3144_v19, %v3209_v30 }
 0x1e6   : > { %v3258_v35 = vmax.bf16 %v1972_v49, %v1876_v18  ;;  %v3263_v51 = vmax.bf16 %v1974_v61, %v1878_v54  ;;  %v1107_v38 = vpop.f32.mrb[104].mxu0  ;;  %v1460_v43 = vpop.f32.mrb[104].mxu1  ;;  %v3409_v18 = vmax.bf16 %v3149_v41, %v3211_v0 }
 0x1e7   : > { %v1729_v27 = vmax.f32 %v1460_v43, 0.0  ;;  %v1109_v39 = vpop.f32.mrb[105].mxu0  ;;  %v1462_v29 = vpop.f32.mrb[105].mxu1  ;;  %v1727_v33 = vmax.f32 %v1107_v38, 0.0  ;;  %v3410_v38 = vmax.bf16 %v3154_v55, %v3213_v13 }
 0x1e8   : > { %v1730_v14 = vmax.f32 %v1462_v29, 0.0  ;;  %v1111_v4 = vpop.f32.mrb[106].mxu0  ;;  %v1464_v48 = vpop.f32.mrb[106].mxu1  ;;  %v1728_v5 = vmax.f32 %v1109_v39, 0.0 }
 0x1e9   : > { %v1731_v32 = vmax.f32 %v1111_v4, 0.0  ;;  %v1733_v22 = vmax.f32 %v1464_v48, 0.0  ;;  %v1113_v24 = vpop.f32.mrb[107].mxu0  ;;  %v1466_v36 = vpop.f32.mrb[107].mxu1 }
 0x1ea   : > { %v1732_v49 = vmax.f32 %v1113_v24, 0.0  ;;  %v1734_v10 = vmax.f32 %v1466_v36, 0.0 }
 0x1eb   : > { %v1879_v46 = vpack.c.bf16 %v1731_v32, %v1727_v33  ;;  %v1881_v50 = vpack.c.bf16 %v1733_v22, %v1729_v27  ;;  %v3411_v27 = vmax.bf16 %v3159_v58, %v3215_v15 }
 0x1ec   : > { %v1880_v12 = vpack.c.bf16 %v1732_v49, %v1728_v5  ;;  %v1882_v61 = vpack.c.bf16 %v1734_v10, %v1730_v14 }
 0x1ed   : > { %v3268_v31 = vmax.bf16 %v1975_v9, %v1879_v46  ;;  %v3273_v44 = vmax.bf16 %v1977_v52, %v1881_v50 }
 0x1ee   : > { %v3278_v11 = vmax.bf16 %v1976_v3, %v1880_v12  ;;  %v3283_v6 = vmax.bf16 %v1978_v60, %v1882_v61  ;;  %v1117_v25 = vpop.f32.mrb[108].mxu0  ;;  %v1470_v45 = vpop.f32.mrb[108].mxu1 }
 0x1ef   : > { %v1737_v62 = vmax.f32 %v1470_v45, 0.0  ;;  %v1119_v40 = vpop.f32.mrb[109].mxu0  ;;  %v1472_v9 = vpop.f32.mrb[109].mxu1  ;;  %v1735_v57 = vmax.f32 %v1117_v25, 0.0 }
 0x1f0   : > { %v1738_v21 = vmax.f32 %v1472_v9, 0.0  ;;  %v1121_v28 = vpop.f32.mrb[110].mxu0  ;;  %v1474_v56 = vpop.f32.mrb[110].mxu1  ;;  %v1736_v1 = vmax.f32 %v1119_v40, 0.0 }
 0x1f1   : > { %v1739_v52 = vmax.f32 %v1121_v28, 0.0  ;;  %v1741_v63 = vmax.f32 %v1474_v56, 0.0  ;;  %v1123_v23 = vpop.f32.mrb[111].mxu0  ;;  %v1476_v7 = vpop.f32.mrb[111].mxu1 }
 0x1f2   : > { %v1740_v3 = vmax.f32 %v1123_v23, 0.0  ;;  %v1742_v16 = vmax.f32 %v1476_v7, 0.0 }
 0x1f3   : > { %v1883_v47 = vpack.c.bf16 %v1739_v52, %v1735_v57  ;;  %v1885_v17 = vpack.c.bf16 %v1741_v63, %v1737_v62 }
 0x1f4   : > { %v1884_v37 = vpack.c.bf16 %v1740_v3, %v1736_v1  ;;  %v1886_v60 = vpack.c.bf16 %v1742_v16, %v1738_v21 }
 0x1f5   : > { %v3288_v34 = vmax.bf16 %v3408_v42, %v1883_v47  ;;  %v3293_v54 = vmax.bf16 %v3409_v18, %v1885_v17 }
 0x1f6   : > { %v3298_v43 = vmax.bf16 %v3410_v38, %v1884_v37  ;;  %v3303_v39 = vmax.bf16 %v3411_v27, %v1886_v60  ;;  %v1127_v29 = vpop.f32.mrb[112].mxu0  ;;  %v1480_v14 = vpop.f32.mrb[112].mxu1 }
 0x1f7   : > { %v1745_v19 = vmax.f32 %v1480_v14, 0.0  ;;  %v1129_v30 = vpop.f32.mrb[113].mxu0  ;;  %v1482_v4 = vpop.f32.mrb[113].mxu1  ;;  %v1743_v0 = vmax.f32 %v1127_v29, 0.0 }
 0x1f8   : > { %v1746_v48 = vmax.f32 %v1482_v4, 0.0  ;;  %v1131_v33 = vpop.f32.mrb[114].mxu0  ;;  %v1484_v41 = vpop.f32.mrb[114].mxu1  ;;  %v1744_v13 = vmax.f32 %v1129_v30, 0.0 }
 0x1f9   : > { %v1747_v32 = vmax.f32 %v1131_v33, 0.0  ;;  %v1749_v22 = vmax.f32 %v1484_v41, 0.0  ;;  %v1133_v24 = vpop.f32.mrb[115].mxu0  ;;  %v1486_v55 = vpop.f32.mrb[115].mxu1 }
 0x1fa   : > { %v1748_v36 = vmax.f32 %v1133_v24, 0.0  ;;  %v1750_v5 = vmax.f32 %v1486_v55, 0.0 }
 0x1fb   : > { %v1887_v49 = vpack.c.bf16 %v1747_v32, %v1743_v0  ;;  %v1889_v58 = vpack.c.bf16 %v1749_v22, %v1745_v19 }
 0x1fc   : > { %v1888_v15 = vpack.c.bf16 %v1748_v36, %v1744_v13  ;;  %v1890_v10 = vpack.c.bf16 %v1750_v5, %v1746_v48 }
 0x1fd   : > { %v1999_v46 = vmax.bf16 %v3228_v59, %v1887_v49  ;;  %v2001_v50 = vmax.bf16 %v3233_v2, %v1889_v58 }
 0x1fe   : > { %v2000_v12 = vmax.bf16 %v3238_v53, %v1888_v15  ;;  %v2002_v61 = vmax.bf16 %v3243_v20, %v1890_v10  ;;  %v1137_v25 = vpop.f32.mrb[116].mxu0  ;;  %v1490_v45 = vpop.f32.mrb[116].mxu1 }
 0x1ff   : > { %v2015_v62 = vunpack.c.l.bf16 %v1999_v46  ;;  %v2019_v40 = vunpack.c.h.bf16 %v1999_v46  ;;  %v1139_v9 = vpop.f32.mrb[117].mxu0  ;;  %v1492_v21 = vpop.f32.mrb[117].mxu1  ;;  %v2017_v28 = vunpack.c.l.bf16 %v2001_v50  ;;  %v2021_v56 = vunpack.c.h.bf16 %v2001_v50 }
 0x200   : > { %v2016_v57 = vunpack.c.l.bf16 %v2000_v12  ;;  %v2020_v52 = vunpack.c.h.bf16 %v2000_v12  ;;  %v1141_v63 = vpop.f32.mrb[118].mxu0  ;;  %v1494_v23 = vpop.f32.mrb[118].mxu1  ;;  %v2018_v59 = vunpack.c.l.bf16 %v2002_v61  ;;  %v1751_v7 = vmax.f32 %v1137_v25, 0.0 }
 0x201   : > { %v1753_v2 = vmax.f32 %v1490_v45, 0.0  ;;  %v1754_v1 = vmax.f32 %v1492_v21, 0.0  ;;  %v1143_v53 = vpop.f32.mrb[119].mxu0  ;;  %v1496_v3 = vpop.f32.mrb[119].mxu1  ;;  %v1755_v47 = vmax.f32 %v1141_v63, 0.0  ;;  %v1757_v17 = vmax.f32 %v1494_v23, 0.0 }
 0x202   : > { %v2047_v20 = vadd.f32 %v2016_v57, %v2015_v62  ;;  %v2048_v16 = vadd.f32 %v2020_v52, %v2019_v40  ;;  %v2022_v37 = vunpack.c.h.bf16 %v2002_v61  ;;  %v1752_v60 = vmax.f32 %v1139_v9, 0.0 }
 0x203   : > { %v1756_v42 = vmax.f32 %v1143_v53, 0.0  ;;  %v1758_v18 = vmax.f32 %v1496_v3, 0.0  ;;  %v1891_v29 = vpack.c.bf16 %v1755_v47, %v1751_v7  ;;  %v1893_v14 = vpack.c.bf16 %v1757_v17, %v1753_v2 }
 0x204   : > { %v2055_v38 = vadd.f32 %v2047_v20, %v2017_v28  ;;  %v2056_v27 = vadd.f32 %v2048_v16, %v2021_v56 }
 0x205   : > { %v1892_v19 = vpack.c.bf16 %v1756_v42, %v1752_v60  ;;  %v1894_v30 = vpack.c.bf16 %v1758_v18, %v1754_v1  ;;  %v2003_v33 = vmax.bf16 %v3248_v8, %v1891_v29  ;;  %v2005_v41 = vmax.bf16 %v3253_v26, %v1893_v14 }
 0x206   : > { %v2063_v4 = vadd.f32 %v2055_v38, %v2018_v59  ;;  %v2064_v48 = vadd.f32 %v2056_v27, %v2022_v37  ;;  %v1147_v0 = vpop.f32.mrb[120].mxu0  ;;  %v1500_v32 = vpop.f32.mrb[120].mxu1 }
 0x207   : > { %v2004_v22 = vmax.bf16 %v3258_v35, %v1892_v19  ;;  %v2006_v24 = vmax.bf16 %v3263_v51, %v1894_v30  ;;  %v1149_v55 = vpop.f32.mrb[121].mxu0  ;;  %v1502_v13 = vpop.f32.mrb[121].mxu1  ;;  %v2023_v36 = vunpack.c.l.bf16 %v2003_v33  ;;  %v2027_v5 = vunpack.c.h.bf16 %v2003_v33 }
 0x208   : > { %2071 = vst [vmem:[%s3314_s30] sm:$0xff] %v2063_v4  ;;  %2072 = vst [vmem:[%s3314_s30 + $0x8] sm:$0xff] %v2064_v48  ;;  %v1759_v49 = vmax.f32 %v1147_v0, 0.0  ;;  %v1761_v8 = vmax.f32 %v1500_v32, 0.0  ;;  %v1151_v58 = vpop.f32.mrb[122].mxu0  ;;  %v1504_v26 = vpop.f32.mrb[122].mxu1  ;;  %v2025_v15 = vunpack.c.l.bf16 %v2005_v41  ;;  %v2029_v10 = vunpack.c.h.bf16 %v2005_v41 }
 0x209   : > { %v2024_v46 = vunpack.c.l.bf16 %v2004_v22  ;;  %v2028_v35 = vunpack.c.h.bf16 %v2004_v22  ;;  %v1153_v50 = vpop.f32.mrb[123].mxu0  ;;  %v1506_v51 = vpop.f32.mrb[123].mxu1  ;;  %v1760_v12 = vmax.f32 %v1149_v55, 0.0  ;;  %v1762_v61 = vmax.f32 %v1502_v13, 0.0 }
 0x20a   : > { %v1763_v25 = vmax.f32 %v1151_v58, 0.0  ;;  %v1765_v45 = vmax.f32 %v1504_v26, 0.0  ;;  %v1764_v9 = vmax.f32 %v1153_v50, 0.0  ;;  %v1766_v21 = vmax.f32 %v1506_v51, 0.0 }
 0x20b   : > { %v2049_v62 = vadd.f32 %v2024_v46, %v2023_v36  ;;  %v2050_v40 = vadd.f32 %v2028_v35, %v2027_v5  ;;  %v2026_v28 = vunpack.c.l.bf16 %v2006_v24  ;;  %v2030_v56 = vunpack.c.h.bf16 %v2006_v24 }
 0x20c   : > { %v1895_v57 = vpack.c.bf16 %v1763_v25, %v1759_v49  ;;  %v1897_v52 = vpack.c.bf16 %v1765_v45, %v1761_v8  ;;  %v1896_v59 = vpack.c.bf16 %v1764_v9, %v1760_v12  ;;  %v1898_v7 = vpack.c.bf16 %v1766_v21, %v1762_v61 }
 0x20d   : > { %v2057_v63 = vadd.f32 %v2049_v62, %v2025_v15  ;;  %v2058_v23 = vadd.f32 %v2050_v40, %v2029_v10 }
 0x20e   : > { %v2007_v2 = vmax.bf16 %v3268_v31, %v1895_v57  ;;  %v2009_v1 = vmax.bf16 %v3273_v44, %v1897_v52  ;;  %v1157_v53 = vpop.f32.mrb[124].mxu0  ;;  %v1510_v3 = vpop.f32.mrb[124].mxu1  ;;  %v2008_v47 = vmax.bf16 %v3278_v11, %v1896_v59  ;;  %v2010_v17 = vmax.bf16 %v3283_v6, %v1898_v7 }
 0x20f   : > { %v2065_v20 = vadd.f32 %v2057_v63, %v2026_v28  ;;  %v2066_v16 = vadd.f32 %v2058_v23, %v2030_v56  ;;  %v1159_v37 = vpop.f32.mrb[125].mxu0  ;;  %v1512_v60 = vpop.f32.mrb[125].mxu1  ;;  %v1767_v48 = vmax.f32 %v1157_v53, 0.0  ;;  %v1769_v33 = vmax.f32 %v1510_v3, 0.0 }
 0x210   : > { %v2031_v42 = vunpack.c.l.bf16 %v2007_v2  ;;  %v2035_v18 = vunpack.c.h.bf16 %v2007_v2  ;;  %v1161_v38 = vpop.f32.mrb[126].mxu0  ;;  %v1514_v27 = vpop.f32.mrb[126].mxu1  ;;  %v2033_v29 = vunpack.c.l.bf16 %v2009_v1  ;;  %v2037_v31 = vunpack.c.h.bf16 %v2009_v1 }
 0x211   : > { %2073 = vst [vmem:[%s3314_s30 + $0x10] sm:$0xff] %v2065_v20  ;;  %2074 = vst [vmem:[%s3314_s30 + $0x18] sm:$0xff] %v2066_v16  ;;  %v2032_v14 = vunpack.c.l.bf16 %v2008_v47  ;;  %v2036_v44 = vunpack.c.h.bf16 %v2008_v47  ;;  %v1163_v19 = vpop.f32.mrb[127].mxu0  ;;  %v1516_v30 = vpop.f32.mrb[127].mxu1  ;;  %v2034_v4 = vunpack.c.l.bf16 %v2010_v17  ;;  %v1770_v11 = vmax.f32 %v1512_v60, 0.0 }
 0x212   : > { %v1771_v0 = vmax.f32 %v1161_v38, 0.0  ;;  %v1773_v32 = vmax.f32 %v1514_v27, 0.0  ;;  %v2038_v22 = vunpack.c.h.bf16 %v2010_v17  ;;  %v1768_v24 = vmax.f32 %v1159_v37, 0.0 }
 0x213   : > { %v2051_v6 = vadd.f32 %v2032_v14, %v2031_v42  ;;  %v2052_v41 = vadd.f32 %v2036_v44, %v2035_v18  ;;  %v1772_v55 = vmax.f32 %v1163_v19, 0.0  ;;  %v1774_v13 = vmax.f32 %v1516_v30, 0.0 }
 0x214   : > { %v1899_v49 = vpack.c.bf16 %v1771_v0, %v1767_v48  ;;  %v1901_v8 = vpack.c.bf16 %v1773_v32, %v1769_v33 }
 0x215   : > { %v2059_v36 = vadd.f32 %v2051_v6, %v2033_v29  ;;  %v2060_v5 = vadd.f32 %v2052_v41, %v2037_v31  ;;  %v1900_v58 = vpack.c.bf16 %v1772_v55, %v1768_v24  ;;  %v1902_v26 = vpack.c.bf16 %v1774_v13, %v1770_v11 }
 0x216   : > { %v2011_v46 = vmax.bf16 %v3288_v34, %v1899_v49  ;;  %v2013_v35 = vmax.bf16 %v3293_v54, %v1901_v8 }
 0x217   : > { %v2067_v15 = vadd.f32 %v2059_v36, %v2034_v4  ;;  %v2068_v10 = vadd.f32 %v2060_v5, %v2038_v22  ;;  %v2012_v50 = vmax.bf16 %v3298_v43, %v1900_v58  ;;  %v2014_v51 = vmax.bf16 %v3303_v39, %v1902_v26 }
 0x218   : > { %v2039_v12 = vunpack.c.l.bf16 %v2011_v46  ;;  %v2043_v61 = vunpack.c.h.bf16 %v2011_v46  ;;  %v2041_v62 = vunpack.c.l.bf16 %v2013_v35  ;;  %v2045_v40 = vunpack.c.h.bf16 %v2013_v35 }
 0x219   : > { %2075 = vst [vmem:[%s3314_s30 + $0x20] sm:$0xff] %v2067_v15  ;;  %2076 = vst [vmem:[%s3314_s30 + $0x28] sm:$0xff] %v2068_v10  ;;  %v2040_v25 = vunpack.c.l.bf16 %v2012_v50  ;;  %v2044_v45 = vunpack.c.h.bf16 %v2012_v50  ;;  %v2042_v54 = vunpack.c.l.bf16 %v2014_v51  ;;  %v2046_v43 = vunpack.c.h.bf16 %v2014_v51 }
 0x21b   : > { %v2053_v34 = vadd.f32 %v2040_v25, %v2039_v12  ;;  %v2054_v9 = vadd.f32 %v2044_v45, %v2043_v61 }
 0x21d   : > { %v2061_v39 = vadd.f32 %v2053_v34, %v2041_v62  ;;  %v2062_v21 = vadd.f32 %v2054_v9, %v2045_v40 }
 0x21f   : > { %v2069_v28 = vadd.f32 %v2061_v39, %v2042_v54  ;;  %v2070_v56 = vadd.f32 %v2062_v21, %v2046_v43 }
 0x221   : > { %2077 = vst [vmem:[%s3314_s30 + $0x30] sm:$0xff] %v2069_v28  ;;  %2078 = vst [vmem:[%s3314_s30 + $0x38] sm:$0xff] %v2070_v56 }
 0x222   : > { %2415 = shalt.err (!%p2412_p7)
}
 0x223   : > { %s2416_s27 = scalar_lea.hbm %s3336_s8, 1024  ;;  %s2420_s3 = scalar_lea.hbm %s3396_s2, 8192 }
 0x224   : > { %p2417_p10 = scmp.ne.s32.totalorder %s3336_s8, %s2416_s27  ;;  %p2421_p13 = scmp.lt.u32.totalorder %s3336_s8, %s3396_s2 }
 0x225   : > { %p2422_p0 = scmp.lt.u32.totalorder %s2420_s3, %s2416_s27  ;;  %p2424_p2 = scmp.lt.u32.totalorder %s2416_s27, %s3336_s8 }
 0x226   : > { %p2418_p11 = pnand %p2417_p10, %p2579_p8 }
 0x227   : > { %p2423_p1 = por %p2422_p0, %p2421_p13 }
 0x228   : > { %p2419_p12 = pneg %p2418_p11 }
 0x229   : > { %p2425_p3 = por %p2424_p2, %p2423_p1 }
 0x22b   : > { %p2426_p4 = pnand %p2425_p3, %p2419_p12 }
 0x22d   : > { %2429 = shalt.err (!%p2426_p4)
}
 0x22e   : > { %s2502_s12 = smov 128   ;;  %s2503_s6 = smov 8  }
 0x22f   : > { %2293 = dma.vmem_to_hbm [thread:$0]  (%p2579_p8), %s3338_s13, 1024, %s3336_s8, %s2080_s17, %s2502_s12, %s2502_s12, %s2503_s6  }
 0x230 PF: > { %p2299_p5 = scmp.ge.s32.totalorder %s2496_s16, 2  ;;  %s2110_s7 = sand.u32 1, %s2468_s9  }
 0x231   : > { %s2111_s18 = scalar_lea.sflag [#allocation4], %s2110_s7 }
 0x232   : > { %p2296_p6 = pnand %p2299_p5, %p2583_p9 }
 0x234   : > { %2463 = dma.done.wait (!%p2296_p6), %s2111_s18, 1024  }
 0x235   : > { %2465 = vsyncadd (!%p2296_p6), %s2111_s18, 4294966272  ;;  %s15_s16 = sadd.s32 1, %s2496_s16   ;;  %s3412_s9 = smov %s2472_s10 }
 0x236   : > { %p12_p7 = scmp.ge.s32.totalorder %s15_s16, 10   ;;  %s3413_s10 = smov %s2476_s11 }
 0x237   : > { %s3414_s11 = smov %s2591_s28  ;;  %s3415_s12 = smov %s2488_s14 }
 0x238   : > { %s3416_s13 = smov %s2492_s15  ;;  %s3417_s14 = smov %s3420_s19 }
 0x239   : > { %s3418_s15 = smov %s3424_s20  ;;  %14 = sbr.rel (!%p12_p7) target bundleno = 5 (0x5), region = 109 }
 0x240   :  { %2116 = vsyncpa [#allocation4], 1 }
 0x241   :  { %2118 = vsyncpa [#allocation4 + $0x1], 1 }

</bundles_post_ra>
